<compile_context>
chip_gen: v7x
topology: tpu7x:2x2x1
jax: 0.10.0
libtpu: 0.0.40
codegen_flags: <defaults>
</compile_context>

<pallas_src>
import functools

import jax
import jax.numpy as jnp
from jax.experimental import pallas as pl
from jax.experimental.pallas import tpu as pltpu


# ============================================================================
# Kernels
# ============================================================================
def prenet_kernel(emb_ref, pos_ref,
                  w1_ref, s1_ref, t1_ref,
                  w2_ref, s2_ref, t2_ref,
                  w3_ref, s3_ref, t3_ref,
                  fcw_ref, fcb_ref,
                  o_ref,
                  pad_ref):
    """Fused EncoderPreNet for one batch element (grid axis = batch).

    emb_ref : (1, S, E) f32            pos_ref : (S, H) f32
    wN_ref  : (5*Cin, H) bf16 im2col   sN/tN   : (1, H) f32 folded-BN scale/shift
    fcw_ref : (H, H) bf16              fcb_ref : (1, H) f32
    o_ref   : (1, S, H) f32            pad_ref : (S+4, Cmax) f32 VMEM scratch
    """
    S = emb_ref.shape[1]

    # Zero the scratch; only the centre rows are overwritten below, so the 2-row halo on
    # each side stays zero (this is the conv's padding=2, done entirely in VMEM).
    pad_ref[...] = jnp.zeros_like(pad_ref)

    def conv5_bn_relu(x, w_ref, scale_ref, shift_ref):
        cin = x.shape[-1]
        pad_ref[2:2 + S, :cin] = x
        # im2col: (S, 5*Cin) -> the 5-tap conv becomes a single MXU matmul (K = 5*Cin).
        cols = jnp.concatenate(
            [pad_ref[k:k + S, :cin] for k in range(5)], axis=-1)
        acc = jnp.dot(cols.astype(jnp.bfloat16), w_ref[...],
                      preferred_element_type=jnp.float32)
        return jnp.maximum(acc * scale_ref[...] + shift_ref[...], 0.0)

    x = emb_ref[0]                                          # (S, E) f32
    x = conv5_bn_relu(x, w1_ref, s1_ref, t1_ref)
    x = conv5_bn_relu(x, w2_ref, s2_ref, t2_ref)
    x = conv5_bn_relu(x, w3_ref, s3_ref, t3_ref)
    x = jnp.dot(x.astype(jnp.bfloat16), fcw_ref[...],
                preferred_element_type=jnp.float32) + fcb_ref[...]
    o_ref[0, :, :] = x + pos_ref[...]                       # positional embedding add


def _layer_norm(x, gamma, beta):
    mean = jnp.mean(x, axis=-1, keepdims=True)
    xc = x - mean
    var = jnp.mean(xc * xc, axis=-1, keepdims=True)
    return xc * jax.lax.rsqrt(var + 1e-5) * gamma + beta


def transformer_block_kernel(heads,
                             x_ref,
                             qkvw_ref, qkvb_ref,
                             fcq_ref, fca_ref, fcb_ref,
                             ln1g_ref, ln1b_ref,
                             w1_ref, b1_ref, w2_ref, b2_ref,
                             ln2g_ref, ln2b_ref,
                             o_ref):
    """Fully fused TransformerBlock for one batch element (grid axis = batch)."""
    S, H = x_ref.shape[1], x_ref.shape[2]
    depth = H // heads
    inv_scale = 2.0 / depth        # reference quirk: energy / (depth ** 1 / 2) == energy * 2/depth

    x = x_ref[0]                                            # (S, H) f32 residual input
    xb = x.astype(jnp.bfloat16)

    # --- fused Q/K/V projection: one (S,H) x (H,3H) matmul (block-diag per-head weight) ----
    qkv = jnp.dot(xb, qkvw_ref[...],
                  preferred_element_type=jnp.float32) + qkvb_ref[...]    # (S, 3H) f32
    q_all = qkv[:, :H]                                      # projected query, (S, H)

    # fc_out(cat([q, attn])) == q @ W_q_half + sum_h attn_h @ W_a_half[h-block] + b
    attn_out = jnp.dot(q_all.astype(jnp.bfloat16), fcq_ref[...],
                       preferred_element_type=jnp.float32)

    for h in range(heads):                                  # static unroll over heads
        lo = h * depth
        qh = qkv[:, lo:lo + depth].astype(jnp.bfloat16)
        kh = qkv[:, H + lo:H + lo + depth].astype(jnp.bfloat16)
        vh = qkv[:, 2 * H + lo:2 * H + lo + depth].astype(jnp.bfloat16)

        energy = jax.lax.dot_general(                       # (S, S) = q . k^T
            qh, kh, (((1,), (1,)), ((), ())),
            preferred_element_type=jnp.float32)
        scores = energy * inv_scale
        scores = scores - jnp.max(scores, axis=-1, keepdims=True)   # stabilized softmax
        p = jnp.exp(scores)
        p = p * pl.reciprocal(jnp.sum(p, axis=-1, keepdims=True), approx=True)

        head_out = jnp.dot(p.astype(jnp.bfloat16), vh,
                           preferred_element_type=jnp.float32)       # (S, depth)
        attn_out = attn_out + jnp.dot(
            head_out.astype(jnp.bfloat16), fca_ref[lo:lo + depth, :],
            preferred_element_type=jnp.float32)

    attn_out = attn_out + fcb_ref[...]

    # --- Add & LayerNorm 1 (dropout = identity in eval mode) -------------------------------
    add1 = _layer_norm(attn_out + x, ln1g_ref[...], ln1b_ref[...])

    # --- FFN: 1x1 conv -> exact GELU -> 1x1 conv -------------------------------------------
    h1 = jnp.dot(add1.astype(jnp.bfloat16), w1_ref[...],
                 preferred_element_type=jnp.float32) + b1_ref[...]
    h1 = 0.5 * h1 * (1.0 + jax.lax.erf(h1 * 0.7071067811865476))     # torch GELU (exact)
    ffn = jnp.dot(h1.astype(jnp.bfloat16), w2_ref[...],
                  preferred_element_type=jnp.float32) + b2_ref[...]

    # --- Add & LayerNorm 2 -------------------------------------------------------------------
    o_ref[0, :, :] = _layer_norm(ffn + add1, ln2g_ref[...], ln2b_ref[...])


# ============================================================================
# pallas_call wrappers
# ============================================================================
def _compiler_params():
    return pltpu.CompilerParams(dimension_semantics=("parallel",))


def prenet_forward(emb, pos, p):
    B, S, E = emb.shape
    H = pos.shape[-1]
    cmax = max(E, H)

    batch3 = lambda b: (b, 0, 0)
    const2 = lambda b: (0, 0)

    in_specs = [
        pl.BlockSpec((1, S, E), batch3),          # emb
        pl.BlockSpec((S, H), const2),             # positional embedding slice
        pl.BlockSpec((5 * E, H), const2), pl.BlockSpec((1, H), const2), pl.BlockSpec((1, H), const2),
        pl.BlockSpec((5 * H, H), const2), pl.BlockSpec((1, H), const2), pl.BlockSpec((1, H), const2),
        pl.BlockSpec((5 * H, H), const2), pl.BlockSpec((1, H), const2), pl.BlockSpec((1, H), const2),
        pl.BlockSpec((H, H), const2), pl.BlockSpec((1, H), const2),
    ]
    return pl.pallas_call(
        prenet_kernel,
        out_shape=jax.ShapeDtypeStruct((B, S, H), jnp.float32),
        grid=(B,),
        in_specs=in_specs,
        out_specs=pl.BlockSpec((1, S, H), batch3),
        scratch_shapes=[pltpu.VMEM((S + 4, cmax), jnp.float32)],
        compiler_params=_compiler_params(),
    )(emb, pos,
      p["conv0_w"], p["conv0_scale"], p["conv0_shift"],
      p["conv1_w"], p["conv1_scale"], p["conv1_shift"],
      p["conv2_w"], p["conv2_scale"], p["conv2_shift"],
      p["prenet_fc_w"], p["prenet_fc_b"])


def transformer_block_forward(x, lp, heads):
    B, S, H = x.shape
    F = lp["ffn_w1"].shape[1]

    batch3 = lambda b: (b, 0, 0)
    const2 = lambda b: (0, 0)

    in_specs = [
        pl.BlockSpec((1, S, H), batch3),                                      # x
        pl.BlockSpec((H, 3 * H), const2), pl.BlockSpec((1, 3 * H), const2),   # fused qkv
        pl.BlockSpec((H, H), const2), pl.BlockSpec((H, H), const2),           # fc_out halves
        pl.BlockSpec((1, H), const2),                                         # fc_out bias
        pl.BlockSpec((1, H), const2), pl.BlockSpec((1, H), const2),           # ln1
        pl.BlockSpec((H, F), const2), pl.BlockSpec((1, F), const2),           # ffn w1/b1
        pl.BlockSpec((F, H), const2), pl.BlockSpec((1, H), const2),           # ffn w2/b2
        pl.BlockSpec((1, H), const2), pl.BlockSpec((1, H), const2),           # ln2
    ]
    return pl.pallas_call(
        functools.partial(transformer_block_kernel, heads),
        out_shape=jax.ShapeDtypeStruct((B, S, H), jnp.float32),
        grid=(B,),
        in_specs=in_specs,
        out_specs=pl.BlockSpec((1, S, H), batch3),
        compiler_params=_compiler_params(),
    )(x,
      lp["qkv_w"], lp["qkv_b"],
      lp["fcq_w"], lp["fca_w"], lp["fc_b"],
      lp["ln1_g"], lp["ln1_b"],
      lp["ffn_w1"], lp["ffn_b1"], lp["ffn_w2"], lp["ffn_b2"],
      lp["ln2_g"], lp["ln2_b"])


# ============================================================================
# Full Encoder forward
# ============================================================================
def encoder_forward(params, tokens, heads):
    B, S = tokens.shape
    # Token embedding gather kept in plain JAX (glue; no win from a Pallas kernel here).
    emb = params["token_embed"][tokens]                    # (B, S, E) f32
    pos = params["pos_embed"][0, :S, :]                    # (S, H)
    x = prenet_forward(emb, pos, params)                   # fused prenet + positional add
    # Dropout layers are identity in eval mode.
    for lp in params["layers"]:
        x = transformer_block_forward(x, lp, heads)
    return x


# ============================================================================
# Deterministic synthetic parameters (shapes from the nn.Module) + fusion prep
# ============================================================================
def make_params(key, vocab, embed_dims, hidden_dims, max_len, heads, expansion, num_layers):
    depth = hidden_dims // heads
    keys = iter(jax.random.split(key, 256))

    def nrm(shape, s=0.1):
        return jax.random.normal(next(keys), shape, jnp.float32) * s

    p = {}
    p["token_embed"] = nrm((vocab, embed_dims), 0.3)
    p["pos_embed"] = jnp.zeros((1, max_len, hidden_dims), jnp.float32)  # torch init: zeros

    # PreNet convs (+ BatchNorm folded into scale/shift; running_mean=0, running_var=1)
    eps = 1e-5
    cins = [embed_dims, hidden_dims, hidden_dims]
    for i in range(3):
        w = nrm((5, cins[i], hidden_dims), 0.1)            # (K, Cin, Cout)
        conv_b = nrm((hidden_dims,), 0.05)
        gamma = 1.0 + nrm((hidden_dims,), 0.05)
        beta = nrm((hidden_dims,), 0.05)
        scale = gamma / jnp.sqrt(1.0 + eps)                # running_var = 1
        shift = beta + scale * (conv_b - 0.0)              # running_mean = 0
        p[f"conv{i}_w"] = w
        p[f"conv{i}_scale"] = scale
        p[f"conv{i}_shift"] = shift

    p["prenet_fc_w"] = nrm((hidden_dims, hidden_dims), 0.1)
    p["prenet_fc_b"] = nrm((hidden_dims,), 0.05)

    layers = []
    for _ in range(num_layers):
        lp = {
            "q_w": nrm((depth, depth), 0.1), "q_b": nrm((depth,), 0.05),
            "k_w": nrm((depth, depth), 0.1), "k_b": nrm((depth,), 0.05),
            "v_w": nrm((depth, depth), 0.1), "v_b": nrm((depth,), 0.05),
            "attn_fc_w": nrm((2 * hidden_dims, hidden_dims), 0.1),
            "attn_fc_b": nrm((hidden_dims,), 0.05),
            "ln1_g": 1.0 + nrm((hidden_dims,), 0.05),
            "ln1_b": nrm((hidden_dims,), 0.05),
            "ffn_w1": nrm((hidden_dims, hidden_dims * expansion), 0.1),
            "ffn_b1": nrm((hidden_dims * expansion,), 0.05),
            "ffn_w2": nrm((hidden_dims * expansion, hidden_dims), 0.1),
            "ffn_b2": nrm((hidden_dims,), 0.05),
            "ln2_g": 1.0 + nrm((hidden_dims,), 0.05),
            "ln2_b": nrm((hidden_dims,), 0.05),
        }
        layers.append(lp)
    p["layers"] = layers
    return p


def prepare_params(p, heads):
    """Fold raw module parameters into kernel-friendly fused / bf16 form (host side, once)."""
    out = {"token_embed": p["token_embed"], "pos_embed": p["pos_embed"]}

    for i in range(3):
        w = p[f"conv{i}_w"]                                # (5, Cin, Cout)
        k, cin, cout = w.shape
        out[f"conv{i}_w"] = w.reshape(k * cin, cout).astype(jnp.bfloat16)   # im2col layout
        out[f"conv{i}_scale"] = p[f"conv{i}_scale"].reshape(1, cout)
        out[f"conv{i}_shift"] = p[f"conv{i}_shift"].reshape(1, cout)

    out["prenet_fc_w"] = p["prenet_fc_w"].astype(jnp.bfloat16)
    out["prenet_fc_b"] = p["prenet_fc_b"].reshape(1, -1)

    eye = jnp.eye(heads, dtype=jnp.float32)
    layers = []
    for lp in p["layers"]:
        depth = lp["q_w"].shape[0]
        H = depth * heads
        # Per-head shared (depth,depth) weights -> block-diagonal (H,H); fuse q/k/v -> (H, 3H).
        qkv_w = jnp.concatenate(
            [jnp.kron(eye, lp["q_w"]), jnp.kron(eye, lp["k_w"]), jnp.kron(eye, lp["v_w"])],
            axis=1)
        qkv_b = jnp.concatenate(
            [jnp.tile(lp["q_b"], heads), jnp.tile(lp["k_b"], heads), jnp.tile(lp["v_b"], heads)])
        fc_w = lp["attn_fc_w"]                             # (2H, H): [query | attn] halves
        layers.append({
            "qkv_w": qkv_w.astype(jnp.bfloat16),
            "qkv_b": qkv_b.reshape(1, 3 * H),
            "fcq_w": fc_w[:H].astype(jnp.bfloat16),
            "fca_w": fc_w[H:].astype(jnp.bfloat16),
            "fc_b": lp["attn_fc_b"].reshape(1, H),
            "ln1_g": lp["ln1_g"].reshape(1, H), "ln1_b": lp["ln1_b"].reshape(1, H),
            "ffn_w1": lp["ffn_w1"].astype(jnp.bfloat16),
            "ffn_b1": lp["ffn_b1"].reshape(1, -1),
            "ffn_w2": lp["ffn_w2"].astype(jnp.bfloat16),
            "ffn_b2": lp["ffn_b2"].reshape(1, -1),
            "ln2_g": lp["ln2_g"].reshape(1, H), "ln2_b": lp["ln2_b"].reshape(1, H),
        })
    out["layers"] = layers
    return out


# ============================================================================
if __name__ == "__main__":
    VOCAB = 20
    EMBED = 32
    HIDDEN = 32
    MAX_LEN = 16
    HEADS = 2
    EXPANSION = 2
    NUM_LAYERS = 2
    B, S = 2, 8

    key = jax.random.PRNGKey(0)
    pkey, xkey = jax.random.split(key)
    raw_params = make_params(pkey, VOCAB, EMBED, HIDDEN, MAX_LEN, HEADS, EXPANSION, NUM_LAYERS)
    params = prepare_params(raw_params, HEADS)

    tokens = jax.random.randint(xkey, (B, S), 0, VOCAB, dtype=jnp.int32)

    fwd = jax.jit(functools.partial(encoder_forward, heads=HEADS))
    out = jax.block_until_ready(fwd(params, tokens))

    assert out.shape == (B, S, HIDDEN), out.shape
    assert bool(jnp.all(jnp.isfinite(out)))
    print("KERNEL_OK")
</pallas_src>

<mosaic_0001>
module attributes {stable_mosaic.version = 11 : i64} {
  func.func @prenet_kernel(%arg0: i32, %arg1: memref<1x8x32xf32, #tpu.memory_space<vmem>>, %arg2: memref<8x32xf32, #tpu.memory_space<vmem>>, %arg3: memref<160x32xbf16, #tpu.memory_space<vmem>>, %arg4: memref<1x32xf32, #tpu.memory_space<vmem>>, %arg5: memref<1x32xf32, #tpu.memory_space<vmem>>, %arg6: memref<160x32xbf16, #tpu.memory_space<vmem>>, %arg7: memref<1x32xf32, #tpu.memory_space<vmem>>, %arg8: memref<1x32xf32, #tpu.memory_space<vmem>>, %arg9: memref<160x32xbf16, #tpu.memory_space<vmem>>, %arg10: memref<1x32xf32, #tpu.memory_space<vmem>>, %arg11: memref<1x32xf32, #tpu.memory_space<vmem>>, %arg12: memref<32x32xbf16, #tpu.memory_space<vmem>>, %arg13: memref<1x32xf32, #tpu.memory_space<vmem>>, %arg14: memref<1x8x32xf32, #tpu.memory_space<vmem>>, %arg15: memref<12x32xf32, #tpu.memory_space<vmem>>) attributes {dimension_semantics = [#tpu.dimension_semantics<parallel>], iteration_bounds = array<i64: 2>, scalar_prefetch = 0 : i64, scratch_operands = 1 : i64, tpu.core_type = #tpu.core_type<tc>, window_params = [{transform_indices = @transform_0, window_bounds = array<i64: 1, 8, 32>}, {pipeline_mode = #tpu.pipeline_mode<synchronous>, transform_indices = @transform_1, window_bounds = array<i64: 8, 32>}, {pipeline_mode = #tpu.pipeline_mode<synchronous>, transform_indices = @transform_2, window_bounds = array<i64: 160, 32>}, {pipeline_mode = #tpu.pipeline_mode<synchronous>, transform_indices = @transform_3, window_bounds = array<i64: 1, 32>}, {pipeline_mode = #tpu.pipeline_mode<synchronous>, transform_indices = @transform_4, window_bounds = array<i64: 1, 32>}, {pipeline_mode = #tpu.pipeline_mode<synchronous>, transform_indices = @transform_5, window_bounds = array<i64: 160, 32>}, {pipeline_mode = #tpu.pipeline_mode<synchronous>, transform_indices = @transform_6, window_bounds = array<i64: 1, 32>}, {pipeline_mode = #tpu.pipeline_mode<synchronous>, transform_indices = @transform_7, window_bounds = array<i64: 1, 32>}, {pipeline_mode = #tpu.pipeline_mode<synchronous>, transform_indices = @transform_8, window_bounds = array<i64: 160, 32>}, {pipeline_mode = #tpu.pipeline_mode<synchronous>, transform_indices = @transform_9, window_bounds = array<i64: 1, 32>}, {pipeline_mode = #tpu.pipeline_mode<synchronous>, transform_indices = @transform_10, window_bounds = array<i64: 1, 32>}, {pipeline_mode = #tpu.pipeline_mode<synchronous>, transform_indices = @transform_11, window_bounds = array<i64: 32, 32>}, {pipeline_mode = #tpu.pipeline_mode<synchronous>, transform_indices = @transform_12, window_bounds = array<i64: 1, 32>}, {transform_indices = @transform_13, window_bounds = array<i64: 1, 8, 32>}]} {
    %cst = arith.constant 0.000000e+00 : f32
    %0 = vector.broadcast %cst : f32 to vector<12x32xf32>
    %c0 = arith.constant 0 : index
    %c0_0 = arith.constant 0 : index
    %1 = vector.load %arg15[%c0, %c0_0] : memref<12x32xf32, #tpu.memory_space<vmem>>, vector<12x32xf32>
    tpu.vector_store %arg15[%c0, %c0_0], %0 {strides = array<i32>} : memref<12x32xf32, #tpu.memory_space<vmem>>, vector<12x32xf32>,
    %c0_1 = arith.constant 0 : index
    %c0_2 = arith.constant 0 : index
    %c0_3 = arith.constant 0 : index
    %2 = vector.load %arg1[%c0_1, %c0_2, %c0_3] : memref<1x8x32xf32, #tpu.memory_space<vmem>>, vector<1x8x32xf32>
    %3 = vector.shape_cast %2 : vector<1x8x32xf32> to vector<8x32xf32>
    %c2 = arith.constant 2 : index
    %c0_4 = arith.constant 0 : index
    %4 = vector.load %arg15[%c2, %c0_4] : memref<12x32xf32, #tpu.memory_space<vmem>>, vector<8x32xf32>
    tpu.vector_store %arg15[%c2, %c0_4], %3 {strides = array<i32>} : memref<12x32xf32, #tpu.memory_space<vmem>>, vector<8x32xf32>,
    %c0_5 = arith.constant 0 : index
    %c0_6 = arith.constant 0 : index
    %5 = vector.load %arg15[%c0_5, %c0_6] : memref<12x32xf32, #tpu.memory_space<vmem>>, vector<8x32xf32>
    %c1 = arith.constant 1 : index
    %c0_7 = arith.constant 0 : index
    %6 = vector.load %arg15[%c1, %c0_7] : memref<12x32xf32, #tpu.memory_space<vmem>>, vector<8x32xf32>
    %c2_8 = arith.constant 2 : index
    %c0_9 = arith.constant 0 : index
    %7 = vector.load %arg15[%c2_8, %c0_9] : memref<12x32xf32, #tpu.memory_space<vmem>>, vector<8x32xf32>
    %c3 = arith.constant 3 : index
    %c0_10 = arith.constant 0 : index
    %8 = vector.load %arg15[%c3, %c0_10] : memref<12x32xf32, #tpu.memory_space<vmem>>, vector<8x32xf32>
    %c4 = arith.constant 4 : index
    %c0_11 = arith.constant 0 : index
    %9 = vector.load %arg15[%c4, %c0_11] : memref<12x32xf32, #tpu.memory_space<vmem>>, vector<8x32xf32>
    %10 = tpu.concatenate %5, %6, %7, %8, %9 in 1 : vector<8x32xf32>, vector<8x32xf32>, vector<8x32xf32>, vector<8x32xf32>, vector<8x32xf32> -> vector<8x160xf32>
    %11 = arith.truncf %10 : vector<8x160xf32> to vector<8x160xbf16>
    %c0_12 = arith.constant 0 : index
    %c0_13 = arith.constant 0 : index
    %12 = vector.load %arg3[%c0_12, %c0_13] : memref<160x32xbf16, #tpu.memory_space<vmem>>, vector<160x32xbf16>
    %cst_14 = arith.constant dense<0.000000e+00> : vector<8x32xf32>
    %13 = tpu.matmul %11, %12, %cst_14 {dimension_numbers = #tpu.dot_dimension_numbers<[1], [0], [0], [1], [0, 0, 1, 1], [], []>} : vector<8x160xbf16>, vector<160x32xbf16>, vector<8x32xf32> -> vector<8x32xf32>
    %c0_15 = arith.constant 0 : index
    %c0_16 = arith.constant 0 : index
    %14 = vector.load %arg4[%c0_15, %c0_16] : memref<1x32xf32, #tpu.memory_space<vmem>>, vector<1x32xf32>
    %15 = vector.broadcast %14 : vector<1x32xf32> to vector<8x32xf32>
    %16 = arith.mulf %13, %15 : vector<8x32xf32>
    %c0_17 = arith.constant 0 : index
    %c0_18 = arith.constant 0 : index
    %17 = vector.load %arg5[%c0_17, %c0_18] : memref<1x32xf32, #tpu.memory_space<vmem>>, vector<1x32xf32>
    %18 = vector.broadcast %17 : vector<1x32xf32> to vector<8x32xf32>
    %19 = arith.addf %16, %18 : vector<8x32xf32>
    %cst_19 = arith.constant 0.000000e+00 : f32
    %20 = vector.broadcast %cst_19 : f32 to vector<8x32xf32>
    %21 = arith.maximumf %19, %20 : vector<8x32xf32>
    %c2_20 = arith.constant 2 : index
    %c0_21 = arith.constant 0 : index
    %22 = vector.load %arg15[%c2_20, %c0_21] : memref<12x32xf32, #tpu.memory_space<vmem>>, vector<8x32xf32>
    tpu.vector_store %arg15[%c2_20, %c0_21], %21 {strides = array<i32>} : memref<12x32xf32, #tpu.memory_space<vmem>>, vector<8x32xf32>,
    %c0_22 = arith.constant 0 : index
    %c0_23 = arith.constant 0 : index
    %23 = vector.load %arg15[%c0_22, %c0_23] : memref<12x32xf32, #tpu.memory_space<vmem>>, vector<8x32xf32>
    %c1_24 = arith.constant 1 : index
    %c0_25 = arith.constant 0 : index
    %24 = vector.load %arg15[%c1_24, %c0_25] : memref<12x32xf32, #tpu.memory_space<vmem>>, vector<8x32xf32>
    %c2_26 = arith.constant 2 : index
    %c0_27 = arith.constant 0 : index
    %25 = vector.load %arg15[%c2_26, %c0_27] : memref<12x32xf32, #tpu.memory_space<vmem>>, vector<8x32xf32>
    %c3_28 = arith.constant 3 : index
    %c0_29 = arith.constant 0 : index
    %26 = vector.load %arg15[%c3_28, %c0_29] : memref<12x32xf32, #tpu.memory_space<vmem>>, vector<8x32xf32>
    %c4_30 = arith.constant 4 : index
    %c0_31 = arith.constant 0 : index
    %27 = vector.load %arg15[%c4_30, %c0_31] : memref<12x32xf32, #tpu.memory_space<vmem>>, vector<8x32xf32>
    %28 = tpu.concatenate %23, %24, %25, %26, %27 in 1 : vector<8x32xf32>, vector<8x32xf32>, vector<8x32xf32>, vector<8x32xf32>, vector<8x32xf32> -> vector<8x160xf32>
    %29 = arith.truncf %28 : vector<8x160xf32> to vector<8x160xbf16>
    %c0_32 = arith.constant 0 : index
    %c0_33 = arith.constant 0 : index
    %30 = vector.load %arg6[%c0_32, %c0_33] : memref<160x32xbf16, #tpu.memory_space<vmem>>, vector<160x32xbf16>
    %cst_34 = arith.constant dense<0.000000e+00> : vector<8x32xf32>
    %31 = tpu.matmul %29, %30, %cst_34 {dimension_numbers = #tpu.dot_dimension_numbers<[1], [0], [0], [1], [0, 0, 1, 1], [], []>} : vector<8x160xbf16>, vector<160x32xbf16>, vector<8x32xf32> -> vector<8x32xf32>
    %c0_35 = arith.constant 0 : index
    %c0_36 = arith.constant 0 : index
    %32 = vector.load %arg7[%c0_35, %c0_36] : memref<1x32xf32, #tpu.memory_space<vmem>>, vector<1x32xf32>
    %33 = vector.broadcast %32 : vector<1x32xf32> to vector<8x32xf32>
    %34 = arith.mulf %31, %33 : vector<8x32xf32>
    %c0_37 = arith.constant 0 : index
    %c0_38 = arith.constant 0 : index
    %35 = vector.load %arg8[%c0_37, %c0_38] : memref<1x32xf32, #tpu.memory_space<vmem>>, vector<1x32xf32>
    %36 = vector.broadcast %35 : vector<1x32xf32> to vector<8x32xf32>
    %37 = arith.addf %34, %36 : vector<8x32xf32>
    %cst_39 = arith.constant 0.000000e+00 : f32
    %38 = vector.broadcast %cst_39 : f32 to vector<8x32xf32>
    %39 = arith.maximumf %37, %38 : vector<8x32xf32>
    %c2_40 = arith.constant 2 : index
    %c0_41 = arith.constant 0 : index
    %40 = vector.load %arg15[%c2_40, %c0_41] : memref<12x32xf32, #tpu.memory_space<vmem>>, vector<8x32xf32>
    tpu.vector_store %arg15[%c2_40, %c0_41], %39 {strides = array<i32>} : memref<12x32xf32, #tpu.memory_space<vmem>>, vector<8x32xf32>,
    %c0_42 = arith.constant 0 : index
    %c0_43 = arith.constant 0 : index
    %41 = vector.load %arg15[%c0_42, %c0_43] : memref<12x32xf32, #tpu.memory_space<vmem>>, vector<8x32xf32>
    %c1_44 = arith.constant 1 : index
    %c0_45 = arith.constant 0 : index
    %42 = vector.load %arg15[%c1_44, %c0_45] : memref<12x32xf32, #tpu.memory_space<vmem>>, vector<8x32xf32>
    %c2_46 = arith.constant 2 : index
    %c0_47 = arith.constant 0 : index
    %43 = vector.load %arg15[%c2_46, %c0_47] : memref<12x32xf32, #tpu.memory_space<vmem>>, vector<8x32xf32>
    %c3_48 = arith.constant 3 : index
    %c0_49 = arith.constant 0 : index
    %44 = vector.load %arg15[%c3_48, %c0_49] : memref<12x32xf32, #tpu.memory_space<vmem>>, vector<8x32xf32>
    %c4_50 = arith.constant 4 : index
    %c0_51 = arith.constant 0 : index
    %45 = vector.load %arg15[%c4_50, %c0_51] : memref<12x32xf32, #tpu.memory_space<vmem>>, vector<8x32xf32>
    %46 = tpu.concatenate %41, %42, %43, %44, %45 in 1 : vector<8x32xf32>, vector<8x32xf32>, vector<8x32xf32>, vector<8x32xf32>, vector<8x32xf32> -> vector<8x160xf32>
    %47 = arith.truncf %46 : vector<8x160xf32> to vector<8x160xbf16>
    %c0_52 = arith.constant 0 : index
    %c0_53 = arith.constant 0 : index
    %48 = vector.load %arg9[%c0_52, %c0_53] : memref<160x32xbf16, #tpu.memory_space<vmem>>, vector<160x32xbf16>
    %cst_54 = arith.constant dense<0.000000e+00> : vector<8x32xf32>
    %49 = tpu.matmul %47, %48, %cst_54 {dimension_numbers = #tpu.dot_dimension_numbers<[1], [0], [0], [1], [0, 0, 1, 1], [], []>} : vector<8x160xbf16>, vector<160x32xbf16>, vector<8x32xf32> -> vector<8x32xf32>
    %c0_55 = arith.constant 0 : index
    %c0_56 = arith.constant 0 : index
    %50 = vector.load %arg10[%c0_55, %c0_56] : memref<1x32xf32, #tpu.memory_space<vmem>>, vector<1x32xf32>
    %51 = vector.broadcast %50 : vector<1x32xf32> to vector<8x32xf32>
    %52 = arith.mulf %49, %51 : vector<8x32xf32>
    %c0_57 = arith.constant 0 : index
    %c0_58 = arith.constant 0 : index
    %53 = vector.load %arg11[%c0_57, %c0_58] : memref<1x32xf32, #tpu.memory_space<vmem>>, vector<1x32xf32>
    %54 = vector.broadcast %53 : vector<1x32xf32> to vector<8x32xf32>
    %55 = arith.addf %52, %54 : vector<8x32xf32>
    %cst_59 = arith.constant 0.000000e+00 : f32
    %56 = vector.broadcast %cst_59 : f32 to vector<8x32xf32>
    %57 = arith.maximumf %55, %56 : vector<8x32xf32>
    %58 = arith.truncf %57 : vector<8x32xf32> to vector<8x32xbf16>
    %c0_60 = arith.constant 0 : index
    %c0_61 = arith.constant 0 : index
    %59 = vector.load %arg12[%c0_60, %c0_61] : memref<32x32xbf16, #tpu.memory_space<vmem>>, vector<32x32xbf16>
    %cst_62 = arith.constant dense<0.000000e+00> : vector<8x32xf32>
    %60 = tpu.matmul %58, %59, %cst_62 {dimension_numbers = #tpu.dot_dimension_numbers<[1], [0], [0], [1], [0, 0, 1, 1], [], []>} : vector<8x32xbf16>, vector<32x32xbf16>, vector<8x32xf32> -> vector<8x32xf32>
    %c0_63 = arith.constant 0 : index
    %c0_64 = arith.constant 0 : index
    %61 = vector.load %arg13[%c0_63, %c0_64] : memref<1x32xf32, #tpu.memory_space<vmem>>, vector<1x32xf32>
    %62 = vector.broadcast %61 : vector<1x32xf32> to vector<8x32xf32>
    %63 = arith.addf %60, %62 : vector<8x32xf32>
    %c0_65 = arith.constant 0 : index
    %c0_66 = arith.constant 0 : index
    %64 = vector.load %arg2[%c0_65, %c0_66] : memref<8x32xf32, #tpu.memory_space<vmem>>, vector<8x32xf32>
    %65 = arith.addf %63, %64 : vector<8x32xf32>
    %c0_67 = arith.constant 0 : index
    %c0_68 = arith.constant 0 : index
    %c0_69 = arith.constant 0 : index
    %66 = vector.load %arg14[%c0_67, %c0_68, %c0_69] : memref<1x8x32xf32, #tpu.memory_space<vmem>>, vector<1x8x32xf32>
    %67 = vector.shape_cast %66 : vector<1x8x32xf32> to vector<8x32xf32>
    %68 = vector.shape_cast %65 : vector<8x32xf32> to vector<1x8x32xf32>
    tpu.vector_store %arg14[%c0_67, %c0_68, %c0_69], %68 {strides = array<i32>} : memref<1x8x32xf32, #tpu.memory_space<vmem>>, vector<1x8x32xf32>,
    return
  }
  func.func @transform_0(%arg0: i32) -> (i32, i32, i32) {
    %c0_i32 = arith.constant 0 : i32
    %c0_i32_0 = arith.constant 0 : i32
    %c0_i32_1 = arith.constant 0 : i32
    return %arg0, %c0_i32, %c0_i32_0 : i32, i32, i32
  }
  func.func @transform_1(%arg0: i32) -> (i32, i32) {
    %c0_i32 = arith.constant 0 : i32
    %c0_i32_0 = arith.constant 0 : i32
    %c0_i32_1 = arith.constant 0 : i32
    return %c0_i32, %c0_i32_0 : i32, i32
  }
  func.func @transform_2(%arg0: i32) -> (i32, i32) {
    %c0_i32 = arith.constant 0 : i32
    %c0_i32_0 = arith.constant 0 : i32
    %c0_i32_1 = arith.constant 0 : i32
    return %c0_i32, %c0_i32_0 : i32, i32
  }
  func.func @transform_3(%arg0: i32) -> (i32, i32) {
    %c0_i32 = arith.constant 0 : i32
    %c0_i32_0 = arith.constant 0 : i32
    %c0_i32_1 = arith.constant 0 : i32
    return %c0_i32, %c0_i32_0 : i32, i32
  }
  func.func @transform_4(%arg0: i32) -> (i32, i32) {
    %c0_i32 = arith.constant 0 : i32
    %c0_i32_0 = arith.constant 0 : i32
    %c0_i32_1 = arith.constant 0 : i32
    return %c0_i32, %c0_i32_0 : i32, i32
  }
  func.func @transform_5(%arg0: i32) -> (i32, i32) {
    %c0_i32 = arith.constant 0 : i32
    %c0_i32_0 = arith.constant 0 : i32
    %c0_i32_1 = arith.constant 0 : i32
    return %c0_i32, %c0_i32_0 : i32, i32
  }
  func.func @transform_6(%arg0: i32) -> (i32, i32) {
    %c0_i32 = arith.constant 0 : i32
    %c0_i32_0 = arith.constant 0 : i32
    %c0_i32_1 = arith.constant 0 : i32
    return %c0_i32, %c0_i32_0 : i32, i32
  }
  func.func @transform_7(%arg0: i32) -> (i32, i32) {
    %c0_i32 = arith.constant 0 : i32
    %c0_i32_0 = arith.constant 0 : i32
    %c0_i32_1 = arith.constant 0 : i32
    return %c0_i32, %c0_i32_0 : i32, i32
  }
  func.func @transform_8(%arg0: i32) -> (i32, i32) {
    %c0_i32 = arith.constant 0 : i32
    %c0_i32_0 = arith.constant 0 : i32
    %c0_i32_1 = arith.constant 0 : i32
    return %c0_i32, %c0_i32_0 : i32, i32
  }
  func.func @transform_9(%arg0: i32) -> (i32, i32) {
    %c0_i32 = arith.constant 0 : i32
    %c0_i32_0 = arith.constant 0 : i32
    %c0_i32_1 = arith.constant 0 : i32
    return %c0_i32, %c0_i32_0 : i32, i32
  }
  func.func @transform_10(%arg0: i32) -> (i32, i32) {
    %c0_i32 = arith.constant 0 : i32
    %c0_i32_0 = arith.constant 0 : i32
    %c0_i32_1 = arith.constant 0 : i32
    return %c0_i32, %c0_i32_0 : i32, i32
  }
  func.func @transform_11(%arg0: i32) -> (i32, i32) {
    %c0_i32 = arith.constant 0 : i32
    %c0_i32_0 = arith.constant 0 : i32
    %c0_i32_1 = arith.constant 0 : i32
    return %c0_i32, %c0_i32_0 : i32, i32
  }
  func.func @transform_12(%arg0: i32) -> (i32, i32) {
    %c0_i32 = arith.constant 0 : i32
    %c0_i32_0 = arith.constant 0 : i32
    %c0_i32_1 = arith.constant 0 : i32
    return %c0_i32, %c0_i32_0 : i32, i32
  }
  func.func @transform_13(%arg0: i32) -> (i32, i32, i32) {
    %c0_i32 = arith.constant 0 : i32
    %c0_i32_0 = arith.constant 0 : i32
    %c0_i32_1 = arith.constant 0 : i32
    return %arg0, %c0_i32, %c0_i32_0 : i32, i32, i32
  }
}

module attributes {stable_mosaic.version = 11 : i64} {
  func.func @transformer_block_kernel(%arg0: i32, %arg1: memref<1x8x32xf32, #tpu.memory_space<vmem>>, %arg2: memref<32x96xbf16, #tpu.memory_space<vmem>>, %arg3: memref<1x96xf32, #tpu.memory_space<vmem>>, %arg4: memref<32x32xbf16, #tpu.memory_space<vmem>>, %arg5: memref<32x32xbf16, #tpu.memory_space<vmem>>, %arg6: memref<1x32xf32, #tpu.memory_space<vmem>>, %arg7: memref<1x32xf32, #tpu.memory_space<vmem>>, %arg8: memref<1x32xf32, #tpu.memory_space<vmem>>, %arg9: memref<32x64xbf16, #tpu.memory_space<vmem>>, %arg10: memref<1x64xf32, #tpu.memory_space<vmem>>, %arg11: memref<64x32xbf16, #tpu.memory_space<vmem>>, %arg12: memref<1x32xf32, #tpu.memory_space<vmem>>, %arg13: memref<1x32xf32, #tpu.memory_space<vmem>>, %arg14: memref<1x32xf32, #tpu.memory_space<vmem>>, %arg15: memref<1x8x32xf32, #tpu.memory_space<vmem>>) attributes {dimension_semantics = [#tpu.dimension_semantics<parallel>], iteration_bounds = array<i64: 2>, scalar_prefetch = 0 : i64, scratch_operands = 0 : i64, tpu.core_type = #tpu.core_type<tc>, window_params = [{transform_indices = @transform_0, window_bounds = array<i64: 1, 8, 32>}, {pipeline_mode = #tpu.pipeline_mode<synchronous>, transform_indices = @transform_1, window_bounds = array<i64: 32, 96>}, {pipeline_mode = #tpu.pipeline_mode<synchronous>, transform_indices = @transform_2, window_bounds = array<i64: 1, 96>}, {pipeline_mode = #tpu.pipeline_mode<synchronous>, transform_indices = @transform_3, window_bounds = array<i64: 32, 32>}, {pipeline_mode = #tpu.pipeline_mode<synchronous>, transform_indices = @transform_4, window_bounds = array<i64: 32, 32>}, {pipeline_mode = #tpu.pipeline_mode<synchronous>, transform_indices = @transform_5, window_bounds = array<i64: 1, 32>}, {pipeline_mode = #tpu.pipeline_mode<synchronous>, transform_indices = @transform_6, window_bounds = array<i64: 1, 32>}, {pipeline_mode = #tpu.pipeline_mode<synchronous>, transform_indices = @transform_7, window_bounds = array<i64: 1, 32>}, {pipeline_mode = #tpu.pipeline_mode<synchronous>, transform_indices = @transform_8, window_bounds = array<i64: 32, 64>}, {pipeline_mode = #tpu.pipeline_mode<synchronous>, transform_indices = @transform_9, window_bounds = array<i64: 1, 64>}, {pipeline_mode = #tpu.pipeline_mode<synchronous>, transform_indices = @transform_10, window_bounds = array<i64: 64, 32>}, {pipeline_mode = #tpu.pipeline_mode<synchronous>, transform_indices = @transform_11, window_bounds = array<i64: 1, 32>}, {pipeline_mode = #tpu.pipeline_mode<synchronous>, transform_indices = @transform_12, window_bounds = array<i64: 1, 32>}, {pipeline_mode = #tpu.pipeline_mode<synchronous>, transform_indices = @transform_13, window_bounds = array<i64: 1, 32>}, {transform_indices = @transform_14, window_bounds = array<i64: 1, 8, 32>}]} {
    %c0 = arith.constant 0 : index
    %c0_0 = arith.constant 0 : index
    %c0_1 = arith.constant 0 : index
    %0 = vector.load %arg1[%c0, %c0_0, %c0_1] : memref<1x8x32xf32, #tpu.memory_space<vmem>>, vector<1x8x32xf32>
    %1 = vector.shape_cast %0 : vector<1x8x32xf32> to vector<8x32xf32>
    %2 = arith.truncf %1 : vector<8x32xf32> to vector<8x32xbf16>
    %c0_2 = arith.constant 0 : index
    %c0_3 = arith.constant 0 : index
    %3 = vector.load %arg2[%c0_2, %c0_3] : memref<32x96xbf16, #tpu.memory_space<vmem>>, vector<32x96xbf16>
    %cst = arith.constant dense<0.000000e+00> : vector<8x96xf32>
    %4 = tpu.matmul %2, %3, %cst {dimension_numbers = #tpu.dot_dimension_numbers<[1], [0], [0], [1], [0, 0, 1, 1], [], []>} : vector<8x32xbf16>, vector<32x96xbf16>, vector<8x96xf32> -> vector<8x96xf32>
    %c0_4 = arith.constant 0 : index
    %c0_5 = arith.constant 0 : index
    %5 = vector.load %arg3[%c0_4, %c0_5] : memref<1x96xf32, #tpu.memory_space<vmem>>, vector<1x96xf32>
    %6 = vector.broadcast %5 : vector<1x96xf32> to vector<8x96xf32>
    %7 = arith.addf %4, %6 : vector<8x96xf32>
    %8 = vector.extract_strided_slice %7 {offsets = [0, 0], sizes = [8, 32], strides = [1, 1]} : vector<8x96xf32> to vector<8x32xf32>
    %9 = arith.truncf %8 : vector<8x32xf32> to vector<8x32xbf16>
    %c0_6 = arith.constant 0 : index
    %c0_7 = arith.constant 0 : index
    %10 = vector.load %arg4[%c0_6, %c0_7] : memref<32x32xbf16, #tpu.memory_space<vmem>>, vector<32x32xbf16>
    %cst_8 = arith.constant dense<0.000000e+00> : vector<8x32xf32>
    %11 = tpu.matmul %9, %10, %cst_8 {dimension_numbers = #tpu.dot_dimension_numbers<[1], [0], [0], [1], [0, 0, 1, 1], [], []>} : vector<8x32xbf16>, vector<32x32xbf16>, vector<8x32xf32> -> vector<8x32xf32>
    %12 = vector.extract_strided_slice %7 {offsets = [0, 0], sizes = [8, 16], strides = [1, 1]} : vector<8x96xf32> to vector<8x16xf32>
    %13 = arith.truncf %12 : vector<8x16xf32> to vector<8x16xbf16>
    %14 = vector.extract_strided_slice %7 {offsets = [0, 32], sizes = [8, 16], strides = [1, 1]} : vector<8x96xf32> to vector<8x16xf32>
    %15 = arith.truncf %14 : vector<8x16xf32> to vector<8x16xbf16>
    %16 = vector.extract_strided_slice %7 {offsets = [0, 64], sizes = [8, 16], strides = [1, 1]} : vector<8x96xf32> to vector<8x16xf32>
    %17 = arith.truncf %16 : vector<8x16xf32> to vector<8x16xbf16>
    %cst_9 = arith.constant dense<0.000000e+00> : vector<8x8xf32>
    %18 = tpu.matmul %13, %15, %cst_9 {dimension_numbers = #tpu.dot_dimension_numbers<[1], [1], [0], [0], [0, 0, 1, 0], [], []>} : vector<8x16xbf16>, vector<8x16xbf16>, vector<8x8xf32> -> vector<8x8xf32>
    %cst_10 = arith.constant 1.250000e-01 : f32
    %19 = vector.broadcast %cst_10 : f32 to vector<8x8xf32>
    %20 = arith.mulf %18, %19 : vector<8x8xf32>
    %cst_11 = arith.constant dense<0xFF800000> : vector<8xf32>
    %21 = vector.multi_reduction <maximumf>, %20, %cst_11 [1] : vector<8x8xf32> to vector<8xf32>
    %22 = vector.shape_cast %21 : vector<8xf32> to vector<8x1xf32>
    %23 = vector.broadcast %22 : vector<8x1xf32> to vector<8x8xf32>
    %24 = arith.subf %20, %23 : vector<8x8xf32>
    %25 = math.exp %24 : vector<8x8xf32>
    %cst_12 = arith.constant dense<0.000000e+00> : vector<8xf32>
    %26 = vector.multi_reduction <add>, %25, %cst_12 [1] : vector<8x8xf32> to vector<8xf32>
    %27 = vector.shape_cast %26 : vector<8xf32> to vector<8x1xf32>
    %28 = tpu.reciprocal %27 {approx = true} : vector<8x1xf32> -> vector<8x1xf32>
    %29 = vector.broadcast %28 : vector<8x1xf32> to vector<8x8xf32>
    %30 = arith.mulf %25, %29 : vector<8x8xf32>
    %31 = arith.truncf %30 : vector<8x8xf32> to vector<8x8xbf16>
    %cst_13 = arith.constant dense<0.000000e+00> : vector<8x16xf32>
    %32 = tpu.matmul %31, %17, %cst_13 {dimension_numbers = #tpu.dot_dimension_numbers<[1], [0], [0], [1], [0, 0, 1, 1], [], []>} : vector<8x8xbf16>, vector<8x16xbf16>, vector<8x16xf32> -> vector<8x16xf32>
    %33 = arith.truncf %32 : vector<8x16xf32> to vector<8x16xbf16>
    %c0_14 = arith.constant 0 : index
    %c0_15 = arith.constant 0 : index
    %34 = vector.load %arg5[%c0_14, %c0_15] : memref<32x32xbf16, #tpu.memory_space<vmem>>, vector<16x32xbf16>
    %cst_16 = arith.constant dense<0.000000e+00> : vector<8x32xf32>
    %35 = tpu.matmul %33, %34, %cst_16 {dimension_numbers = #tpu.dot_dimension_numbers<[1], [0], [0], [1], [0, 0, 1, 1], [], []>} : vector<8x16xbf16>, vector<16x32xbf16>, vector<8x32xf32> -> vector<8x32xf32>
    %36 = arith.addf %11, %35 : vector<8x32xf32>
    %37 = vector.extract_strided_slice %7 {offsets = [0, 16], sizes = [8, 16], strides = [1, 1]} : vector<8x96xf32> to vector<8x16xf32>
    %38 = arith.truncf %37 : vector<8x16xf32> to vector<8x16xbf16>
    %39 = vector.extract_strided_slice %7 {offsets = [0, 48], sizes = [8, 16], strides = [1, 1]} : vector<8x96xf32> to vector<8x16xf32>
    %40 = arith.truncf %39 : vector<8x16xf32> to vector<8x16xbf16>
    %41 = vector.extract_strided_slice %7 {offsets = [0, 80], sizes = [8, 16], strides = [1, 1]} : vector<8x96xf32> to vector<8x16xf32>
    %42 = arith.truncf %41 : vector<8x16xf32> to vector<8x16xbf16>
    %cst_17 = arith.constant dense<0.000000e+00> : vector<8x8xf32>
    %43 = tpu.matmul %38, %40, %cst_17 {dimension_numbers = #tpu.dot_dimension_numbers<[1], [1], [0], [0], [0, 0, 1, 0], [], []>} : vector<8x16xbf16>, vector<8x16xbf16>, vector<8x8xf32> -> vector<8x8xf32>
    %cst_18 = arith.constant 1.250000e-01 : f32
    %44 = vector.broadcast %cst_18 : f32 to vector<8x8xf32>
    %45 = arith.mulf %43, %44 : vector<8x8xf32>
    %cst_19 = arith.constant dense<0xFF800000> : vector<8xf32>
    %46 = vector.multi_reduction <maximumf>, %45, %cst_19 [1] : vector<8x8xf32> to vector<8xf32>
    %47 = vector.shape_cast %46 : vector<8xf32> to vector<8x1xf32>
    %48 = vector.broadcast %47 : vector<8x1xf32> to vector<8x8xf32>
    %49 = arith.subf %45, %48 : vector<8x8xf32>
    %50 = math.exp %49 : vector<8x8xf32>
    %cst_20 = arith.constant dense<0.000000e+00> : vector<8xf32>
    %51 = vector.multi_reduction <add>, %50, %cst_20 [1] : vector<8x8xf32> to vector<8xf32>
    %52 = vector.shape_cast %51 : vector<8xf32> to vector<8x1xf32>
    %53 = tpu.reciprocal %52 {approx = true} : vector<8x1xf32> -> vector<8x1xf32>
    %54 = vector.broadcast %53 : vector<8x1xf32> to vector<8x8xf32>
    %55 = arith.mulf %50, %54 : vector<8x8xf32>
    %56 = arith.truncf %55 : vector<8x8xf32> to vector<8x8xbf16>
    %cst_21 = arith.constant dense<0.000000e+00> : vector<8x16xf32>
    %57 = tpu.matmul %56, %42, %cst_21 {dimension_numbers = #tpu.dot_dimension_numbers<[1], [0], [0], [1], [0, 0, 1, 1], [], []>} : vector<8x8xbf16>, vector<8x16xbf16>, vector<8x16xf32> -> vector<8x16xf32>
    %58 = arith.truncf %57 : vector<8x16xf32> to vector<8x16xbf16>
    %c16 = arith.constant 16 : index
    %c0_22 = arith.constant 0 : index
    %59 = vector.load %arg5[%c16, %c0_22] : memref<32x32xbf16, #tpu.memory_space<vmem>>, vector<16x32xbf16>
    %cst_23 = arith.constant dense<0.000000e+00> : vector<8x32xf32>
    %60 = tpu.matmul %58, %59, %cst_23 {dimension_numbers = #tpu.dot_dimension_numbers<[1], [0], [0], [1], [0, 0, 1, 1], [], []>} : vector<8x16xbf16>, vector<16x32xbf16>, vector<8x32xf32> -> vector<8x32xf32>
    %61 = arith.addf %36, %60 : vector<8x32xf32>
    %c0_24 = arith.constant 0 : index
    %c0_25 = arith.constant 0 : index
    %62 = vector.load %arg6[%c0_24, %c0_25] : memref<1x32xf32, #tpu.memory_space<vmem>>, vector<1x32xf32>
    %63 = vector.broadcast %62 : vector<1x32xf32> to vector<8x32xf32>
    %64 = arith.addf %61, %63 : vector<8x32xf32>
    %65 = arith.addf %64, %1 : vector<8x32xf32>
    %c0_26 = arith.constant 0 : index
    %c0_27 = arith.constant 0 : index
    %66 = vector.load %arg7[%c0_26, %c0_27] : memref<1x32xf32, #tpu.memory_space<vmem>>, vector<1x32xf32>
    %c0_28 = arith.constant 0 : index
    %c0_29 = arith.constant 0 : index
    %67 = vector.load %arg8[%c0_28, %c0_29] : memref<1x32xf32, #tpu.memory_space<vmem>>, vector<1x32xf32>
    %cst_30 = arith.constant dense<0.000000e+00> : vector<8xf32>
    %68 = vector.multi_reduction <add>, %65, %cst_30 [1] : vector<8x32xf32> to vector<8xf32>
    %69 = vector.shape_cast %68 : vector<8xf32> to vector<8x1xf32>
    %cst_31 = arith.constant 3.200000e+01 : f32
    %70 = vector.broadcast %cst_31 : f32 to vector<8x1xf32>
    %71 = arith.divf %69, %70 : vector<8x1xf32>
    %72 = vector.broadcast %71 : vector<8x1xf32> to vector<8x32xf32>
    %73 = arith.subf %65, %72 : vector<8x32xf32>
    %74 = arith.mulf %73, %73 : vector<8x32xf32>
    %cst_32 = arith.constant dense<0.000000e+00> : vector<8xf32>
    %75 = vector.multi_reduction <add>, %74, %cst_32 [1] : vector<8x32xf32> to vector<8xf32>
    %76 = vector.shape_cast %75 : vector<8xf32> to vector<8x1xf32>
    %cst_33 = arith.constant 3.200000e+01 : f32
    %77 = vector.broadcast %cst_33 : f32 to vector<8x1xf32>
    %78 = arith.divf %76, %77 : vector<8x1xf32>
    %cst_34 = arith.constant 9.99999974E-6 : f32
    %79 = vector.broadcast %cst_34 : f32 to vector<8x1xf32>
    %80 = arith.addf %78, %79 : vector<8x1xf32>
    %81 = math.rsqrt %80 : vector<8x1xf32>
    %82 = vector.broadcast %81 : vector<8x1xf32> to vector<8x32xf32>
    %83 = arith.mulf %73, %82 : vector<8x32xf32>
    %84 = vector.broadcast %66 : vector<1x32xf32> to vector<8x32xf32>
    %85 = arith.mulf %83, %84 : vector<8x32xf32>
    %86 = vector.broadcast %67 : vector<1x32xf32> to vector<8x32xf32>
    %87 = arith.addf %85, %86 : vector<8x32xf32>
    %88 = arith.truncf %87 : vector<8x32xf32> to vector<8x32xbf16>
    %c0_35 = arith.constant 0 : index
    %c0_36 = arith.constant 0 : index
    %89 = vector.load %arg9[%c0_35, %c0_36] : memref<32x64xbf16, #tpu.memory_space<vmem>>, vector<32x64xbf16>
    %cst_37 = arith.constant dense<0.000000e+00> : vector<8x64xf32>
    %90 = tpu.matmul %88, %89, %cst_37 {dimension_numbers = #tpu.dot_dimension_numbers<[1], [0], [0], [1], [0, 0, 1, 1], [], []>} : vector<8x32xbf16>, vector<32x64xbf16>, vector<8x64xf32> -> vector<8x64xf32>
    %c0_38 = arith.constant 0 : index
    %c0_39 = arith.constant 0 : index
    %91 = vector.load %arg10[%c0_38, %c0_39] : memref<1x64xf32, #tpu.memory_space<vmem>>, vector<1x64xf32>
    %92 = vector.broadcast %91 : vector<1x64xf32> to vector<8x64xf32>
    %93 = arith.addf %90, %92 : vector<8x64xf32>
    %cst_40 = arith.constant 5.000000e-01 : f32
    %94 = vector.broadcast %cst_40 : f32 to vector<8x64xf32>
    %95 = arith.mulf %94, %93 : vector<8x64xf32>
    %cst_41 = arith.constant 0.707106769 : f32
    %96 = vector.broadcast %cst_41 : f32 to vector<8x64xf32>
    %97 = arith.mulf %93, %96 : vector<8x64xf32>
    %98 = math.erf %97 : vector<8x64xf32>
    %cst_42 = arith.constant 1.000000e+00 : f32
    %99 = vector.broadcast %cst_42 : f32 to vector<8x64xf32>
    %100 = arith.addf %99, %98 : vector<8x64xf32>
    %101 = arith.mulf %95, %100 : vector<8x64xf32>
    %102 = arith.truncf %101 : vector<8x64xf32> to vector<8x64xbf16>
    %c0_43 = arith.constant 0 : index
    %c0_44 = arith.constant 0 : index
    %103 = vector.load %arg11[%c0_43, %c0_44] : memref<64x32xbf16, #tpu.memory_space<vmem>>, vector<64x32xbf16>
    %cst_45 = arith.constant dense<0.000000e+00> : vector<8x32xf32>
    %104 = tpu.matmul %102, %103, %cst_45 {dimension_numbers = #tpu.dot_dimension_numbers<[1], [0], [0], [1], [0, 0, 1, 1], [], []>} : vector<8x64xbf16>, vector<64x32xbf16>, vector<8x32xf32> -> vector<8x32xf32>
    %c0_46 = arith.constant 0 : index
    %c0_47 = arith.constant 0 : index
    %105 = vector.load %arg12[%c0_46, %c0_47] : memref<1x32xf32, #tpu.memory_space<vmem>>, vector<1x32xf32>
    %106 = vector.broadcast %105 : vector<1x32xf32> to vector<8x32xf32>
    %107 = arith.addf %104, %106 : vector<8x32xf32>
    %108 = arith.addf %107, %87 : vector<8x32xf32>
    %c0_48 = arith.constant 0 : index
    %c0_49 = arith.constant 0 : index
    %109 = vector.load %arg13[%c0_48, %c0_49] : memref<1x32xf32, #tpu.memory_space<vmem>>, vector<1x32xf32>
    %c0_50 = arith.constant 0 : index
    %c0_51 = arith.constant 0 : index
    %110 = vector.load %arg14[%c0_50, %c0_51] : memref<1x32xf32, #tpu.memory_space<vmem>>, vector<1x32xf32>
    %cst_52 = arith.constant dense<0.000000e+00> : vector<8xf32>
    %111 = vector.multi_reduction <add>, %108, %cst_52 [1] : vector<8x32xf32> to vector<8xf32>
    %112 = vector.shape_cast %111 : vector<8xf32> to vector<8x1xf32>
    %cst_53 = arith.constant 3.200000e+01 : f32
    %113 = vector.broadcast %cst_53 : f32 to vector<8x1xf32>
    %114 = arith.divf %112, %113 : vector<8x1xf32>
    %115 = vector.broadcast %114 : vector<8x1xf32> to vector<8x32xf32>
    %116 = arith.subf %108, %115 : vector<8x32xf32>
    %117 = arith.mulf %116, %116 : vector<8x32xf32>
    %cst_54 = arith.constant dense<0.000000e+00> : vector<8xf32>
    %118 = vector.multi_reduction <add>, %117, %cst_54 [1] : vector<8x32xf32> to vector<8xf32>
    %119 = vector.shape_cast %118 : vector<8xf32> to vector<8x1xf32>
    %cst_55 = arith.constant 3.200000e+01 : f32
    %120 = vector.broadcast %cst_55 : f32 to vector<8x1xf32>
    %121 = arith.divf %119, %120 : vector<8x1xf32>
    %cst_56 = arith.constant 9.99999974E-6 : f32
    %122 = vector.broadcast %cst_56 : f32 to vector<8x1xf32>
    %123 = arith.addf %121, %122 : vector<8x1xf32>
    %124 = math.rsqrt %123 : vector<8x1xf32>
    %125 = vector.broadcast %124 : vector<8x1xf32> to vector<8x32xf32>
    %126 = arith.mulf %116, %125 : vector<8x32xf32>
    %127 = vector.broadcast %109 : vector<1x32xf32> to vector<8x32xf32>
    %128 = arith.mulf %126, %127 : vector<8x32xf32>
    %129 = vector.broadcast %110 : vector<1x32xf32> to vector<8x32xf32>
    %130 = arith.addf %128, %129 : vector<8x32xf32>
    %c0_57 = arith.constant 0 : index
    %c0_58 = arith.constant 0 : index
    %c0_59 = arith.constant 0 : index
    %131 = vector.load %arg15[%c0_57, %c0_58, %c0_59] : memref<1x8x32xf32, #tpu.memory_space<vmem>>, vector<1x8x32xf32>
    %132 = vector.shape_cast %131 : vector<1x8x32xf32> to vector<8x32xf32>
    %133 = vector.shape_cast %130 : vector<8x32xf32> to vector<1x8x32xf32>
    tpu.vector_store %arg15[%c0_57, %c0_58, %c0_59], %133 {strides = array<i32>} : memref<1x8x32xf32, #tpu.memory_space<vmem>>, vector<1x8x32xf32>,
    return
  }
  func.func @transform_0(%arg0: i32) -> (i32, i32, i32) {
    %c0_i32 = arith.constant 0 : i32
    %c0_i32_0 = arith.constant 0 : i32
    %c0_i32_1 = arith.constant 0 : i32
    return %arg0, %c0_i32, %c0_i32_0 : i32, i32, i32
  }
  func.func @transform_1(%arg0: i32) -> (i32, i32) {
    %c0_i32 = arith.constant 0 : i32
    %c0_i32_0 = arith.constant 0 : i32
    %c0_i32_1 = arith.constant 0 : i32
    return %c0_i32, %c0_i32_0 : i32, i32
  }
  func.func @transform_2(%arg0: i32) -> (i32, i32) {
    %c0_i32 = arith.constant 0 : i32
    %c0_i32_0 = arith.constant 0 : i32
    %c0_i32_1 = arith.constant 0 : i32
    return %c0_i32, %c0_i32_0 : i32, i32
  }
  func.func @transform_3(%arg0: i32) -> (i32, i32) {
    %c0_i32 = arith.constant 0 : i32
    %c0_i32_0 = arith.constant 0 : i32
    %c0_i32_1 = arith.constant 0 : i32
    return %c0_i32, %c0_i32_0 : i32, i32
  }
  func.func @transform_4(%arg0: i32) -> (i32, i32) {
    %c0_i32 = arith.constant 0 : i32
    %c0_i32_0 = arith.constant 0 : i32
    %c0_i32_1 = arith.constant 0 : i32
    return %c0_i32, %c0_i32_0 : i32, i32
  }
  func.func @transform_5(%arg0: i32) -> (i32, i32) {
    %c0_i32 = arith.constant 0 : i32
    %c0_i32_0 = arith.constant 0 : i32
    %c0_i32_1 = arith.constant 0 : i32
    return %c0_i32, %c0_i32_0 : i32, i32
  }
  func.func @transform_6(%arg0: i32) -> (i32, i32) {
    %c0_i32 = arith.constant 0 : i32
    %c0_i32_0 = arith.constant 0 : i32
    %c0_i32_1 = arith.constant 0 : i32
    return %c0_i32, %c0_i32_0 : i32, i32
  }
  func.func @transform_7(%arg0: i32) -> (i32, i32) {
    %c0_i32 = arith.constant 0 : i32
    %c0_i32_0 = arith.constant 0 : i32
    %c0_i32_1 = arith.constant 0 : i32
    return %c0_i32, %c0_i32_0 : i32, i32
  }
  func.func @transform_8(%arg0: i32) -> (i32, i32) {
    %c0_i32 = arith.constant 0 : i32
    %c0_i32_0 = arith.constant 0 : i32
    %c0_i32_1 = arith.constant 0 : i32
    return %c0_i32, %c0_i32_0 : i32, i32
  }
  func.func @transform_9(%arg0: i32) -> (i32, i32) {
    %c0_i32 = arith.constant 0 : i32
    %c0_i32_0 = arith.constant 0 : i32
    %c0_i32_1 = arith.constant 0 : i32
    return %c0_i32, %c0_i32_0 : i32, i32
  }
  func.func @transform_10(%arg0: i32) -> (i32, i32) {
    %c0_i32 = arith.constant 0 : i32
    %c0_i32_0 = arith.constant 0 : i32
    %c0_i32_1 = arith.constant 0 : i32
    return %c0_i32, %c0_i32_0 : i32, i32
  }
  func.func @transform_11(%arg0: i32) -> (i32, i32) {
    %c0_i32 = arith.constant 0 : i32
    %c0_i32_0 = arith.constant 0 : i32
    %c0_i32_1 = arith.constant 0 : i32
    return %c0_i32, %c0_i32_0 : i32, i32
  }
  func.func @transform_12(%arg0: i32) -> (i32, i32) {
    %c0_i32 = arith.constant 0 : i32
    %c0_i32_0 = arith.constant 0 : i32
    %c0_i32_1 = arith.constant 0 : i32
    return %c0_i32, %c0_i32_0 : i32, i32
  }
  func.func @transform_13(%arg0: i32) -> (i32, i32) {
    %c0_i32 = arith.constant 0 : i32
    %c0_i32_0 = arith.constant 0 : i32
    %c0_i32_1 = arith.constant 0 : i32
    return %c0_i32, %c0_i32_0 : i32, i32
  }
  func.func @transform_14(%arg0: i32) -> (i32, i32, i32) {
    %c0_i32 = arith.constant 0 : i32
    %c0_i32_0 = arith.constant 0 : i32
    %c0_i32_1 = arith.constant 0 : i32
    return %arg0, %c0_i32, %c0_i32_0 : i32, i32, i32
  }
}

module attributes {stable_mosaic.version = 11 : i64} {
  func.func @transformer_block_kernel(%arg0: i32, %arg1: memref<1x8x32xf32, #tpu.memory_space<vmem>>, %arg2: memref<32x96xbf16, #tpu.memory_space<vmem>>, %arg3: memref<1x96xf32, #tpu.memory_space<vmem>>, %arg4: memref<32x32xbf16, #tpu.memory_space<vmem>>, %arg5: memref<32x32xbf16, #tpu.memory_space<vmem>>, %arg6: memref<1x32xf32, #tpu.memory_space<vmem>>, %arg7: memref<1x32xf32, #tpu.memory_space<vmem>>, %arg8: memref<1x32xf32, #tpu.memory_space<vmem>>, %arg9: memref<32x64xbf16, #tpu.memory_space<vmem>>, %arg10: memref<1x64xf32, #tpu.memory_space<vmem>>, %arg11: memref<64x32xbf16, #tpu.memory_space<vmem>>, %arg12: memref<1x32xf32, #tpu.memory_space<vmem>>, %arg13: memref<1x32xf32, #tpu.memory_space<vmem>>, %arg14: memref<1x32xf32, #tpu.memory_space<vmem>>, %arg15: memref<1x8x32xf32, #tpu.memory_space<vmem>>) attributes {dimension_semantics = [#tpu.dimension_semantics<parallel>], iteration_bounds = array<i64: 2>, scalar_prefetch = 0 : i64, scratch_operands = 0 : i64, tpu.core_type = #tpu.core_type<tc>, window_params = [{transform_indices = @transform_0, window_bounds = array<i64: 1, 8, 32>}, {pipeline_mode = #tpu.pipeline_mode<synchronous>, transform_indices = @transform_1, window_bounds = array<i64: 32, 96>}, {pipeline_mode = #tpu.pipeline_mode<synchronous>, transform_indices = @transform_2, window_bounds = array<i64: 1, 96>}, {pipeline_mode = #tpu.pipeline_mode<synchronous>, transform_indices = @transform_3, window_bounds = array<i64: 32, 32>}, {pipeline_mode = #tpu.pipeline_mode<synchronous>, transform_indices = @transform_4, window_bounds = array<i64: 32, 32>}, {pipeline_mode = #tpu.pipeline_mode<synchronous>, transform_indices = @transform_5, window_bounds = array<i64: 1, 32>}, {pipeline_mode = #tpu.pipeline_mode<synchronous>, transform_indices = @transform_6, window_bounds = array<i64: 1, 32>}, {pipeline_mode = #tpu.pipeline_mode<synchronous>, transform_indices = @transform_7, window_bounds = array<i64: 1, 32>}, {pipeline_mode = #tpu.pipeline_mode<synchronous>, transform_indices = @transform_8, window_bounds = array<i64: 32, 64>}, {pipeline_mode = #tpu.pipeline_mode<synchronous>, transform_indices = @transform_9, window_bounds = array<i64: 1, 64>}, {pipeline_mode = #tpu.pipeline_mode<synchronous>, transform_indices = @transform_10, window_bounds = array<i64: 64, 32>}, {pipeline_mode = #tpu.pipeline_mode<synchronous>, transform_indices = @transform_11, window_bounds = array<i64: 1, 32>}, {pipeline_mode = #tpu.pipeline_mode<synchronous>, transform_indices = @transform_12, window_bounds = array<i64: 1, 32>}, {pipeline_mode = #tpu.pipeline_mode<synchronous>, transform_indices = @transform_13, window_bounds = array<i64: 1, 32>}, {transform_indices = @transform_14, window_bounds = array<i64: 1, 8, 32>}]} {
    %c0 = arith.constant 0 : index
    %c0_0 = arith.constant 0 : index
    %c0_1 = arith.constant 0 : index
    %0 = vector.load %arg1[%c0, %c0_0, %c0_1] : memref<1x8x32xf32, #tpu.memory_space<vmem>>, vector<1x8x32xf32>
    %1 = vector.shape_cast %0 : vector<1x8x32xf32> to vector<8x32xf32>
    %2 = arith.truncf %1 : vector<8x32xf32> to vector<8x32xbf16>
    %c0_2 = arith.constant 0 : index
    %c0_3 = arith.constant 0 : index
    %3 = vector.load %arg2[%c0_2, %c0_3] : memref<32x96xbf16, #tpu.memory_space<vmem>>, vector<32x96xbf16>
    %cst = arith.constant dense<0.000000e+00> : vector<8x96xf32>
    %4 = tpu.matmul %2, %3, %cst {dimension_numbers = #tpu.dot_dimension_numbers<[1], [0], [0], [1], [0, 0, 1, 1], [], []>} : vector<8x32xbf16>, vector<32x96xbf16>, vector<8x96xf32> -> vector<8x96xf32>
    %c0_4 = arith.constant 0 : index
    %c0_5 = arith.constant 0 : index
    %5 = vector.load %arg3[%c0_4, %c0_5] : memref<1x96xf32, #tpu.memory_space<vmem>>, vector<1x96xf32>
    %6 = vector.broadcast %5 : vector<1x96xf32> to vector<8x96xf32>
    %7 = arith.addf %4, %6 : vector<8x96xf32>
    %8 = vector.extract_strided_slice %7 {offsets = [0, 0], sizes = [8, 32], strides = [1, 1]} : vector<8x96xf32> to vector<8x32xf32>
    %9 = arith.truncf %8 : vector<8x32xf32> to vector<8x32xbf16>
    %c0_6 = arith.constant 0 : index
    %c0_7 = arith.constant 0 : index
    %10 = vector.load %arg4[%c0_6, %c0_7] : memref<32x32xbf16, #tpu.memory_space<vmem>>, vector<32x32xbf16>
    %cst_8 = arith.constant dense<0.000000e+00> : vector<8x32xf32>
    %11 = tpu.matmul %9, %10, %cst_8 {dimension_numbers = #tpu.dot_dimension_numbers<[1], [0], [0], [1], [0, 0, 1, 1], [], []>} : vector<8x32xbf16>, vector<32x32xbf16>, vector<8x32xf32> -> vector<8x32xf32>
    %12 = vector.extract_strided_slice %7 {offsets = [0, 0], sizes = [8, 16], strides = [1, 1]} : vector<8x96xf32> to vector<8x16xf32>
    %13 = arith.truncf %12 : vector<8x16xf32> to vector<8x16xbf16>
    %14 = vector.extract_strided_slice %7 {offsets = [0, 32], sizes = [8, 16], strides = [1, 1]} : vector<8x96xf32> to vector<8x16xf32>
    %15 = arith.truncf %14 : vector<8x16xf32> to vector<8x16xbf16>
    %16 = vector.extract_strided_slice %7 {offsets = [0, 64], sizes = [8, 16], strides = [1, 1]} : vector<8x96xf32> to vector<8x16xf32>
    %17 = arith.truncf %16 : vector<8x16xf32> to vector<8x16xbf16>
    %cst_9 = arith.constant dense<0.000000e+00> : vector<8x8xf32>
    %18 = tpu.matmul %13, %15, %cst_9 {dimension_numbers = #tpu.dot_dimension_numbers<[1], [1], [0], [0], [0, 0, 1, 0], [], []>} : vector<8x16xbf16>, vector<8x16xbf16>, vector<8x8xf32> -> vector<8x8xf32>
    %cst_10 = arith.constant 1.250000e-01 : f32
    %19 = vector.broadcast %cst_10 : f32 to vector<8x8xf32>
    %20 = arith.mulf %18, %19 : vector<8x8xf32>
    %cst_11 = arith.constant dense<0xFF800000> : vector<8xf32>
    %21 = vector.multi_reduction <maximumf>, %20, %cst_11 [1] : vector<8x8xf32> to vector<8xf32>
    %22 = vector.shape_cast %21 : vector<8xf32> to vector<8x1xf32>
    %23 = vector.broadcast %22 : vector<8x1xf32> to vector<8x8xf32>
    %24 = arith.subf %20, %23 : vector<8x8xf32>
    %25 = math.exp %24 : vector<8x8xf32>
    %cst_12 = arith.constant dense<0.000000e+00> : vector<8xf32>
    %26 = vector.multi_reduction <add>, %25, %cst_12 [1] : vector<8x8xf32> to vector<8xf32>
    %27 = vector.shape_cast %26 : vector<8xf32> to vector<8x1xf32>
    %28 = tpu.reciprocal %27 {approx = true} : vector<8x1xf32> -> vector<8x1xf32>
    %29 = vector.broadcast %28 : vector<8x1xf32> to vector<8x8xf32>
    %30 = arith.mulf %25, %29 : vector<8x8xf32>
    %31 = arith.truncf %30 : vector<8x8xf32> to vector<8x8xbf16>
    %cst_13 = arith.constant dense<0.000000e+00> : vector<8x16xf32>
    %32 = tpu.matmul %31, %17, %cst_13 {dimension_numbers = #tpu.dot_dimension_numbers<[1], [0], [0], [1], [0, 0, 1, 1], [], []>} : vector<8x8xbf16>, vector<8x16xbf16>, vector<8x16xf32> -> vector<8x16xf32>
    %33 = arith.truncf %32 : vector<8x16xf32> to vector<8x16xbf16>
    %c0_14 = arith.constant 0 : index
    %c0_15 = arith.constant 0 : index
    %34 = vector.load %arg5[%c0_14, %c0_15] : memref<32x32xbf16, #tpu.memory_space<vmem>>, vector<16x32xbf16>
    %cst_16 = arith.constant dense<0.000000e+00> : vector<8x32xf32>
    %35 = tpu.matmul %33, %34, %cst_16 {dimension_numbers = #tpu.dot_dimension_numbers<[1], [0], [0], [1], [0, 0, 1, 1], [], []>} : vector<8x16xbf16>, vector<16x32xbf16>, vector<8x32xf32> -> vector<8x32xf32>
    %36 = arith.addf %11, %35 : vector<8x32xf32>
    %37 = vector.extract_strided_slice %7 {offsets = [0, 16], sizes = [8, 16], strides = [1, 1]} : vector<8x96xf32> to vector<8x16xf32>
    %38 = arith.truncf %37 : vector<8x16xf32> to vector<8x16xbf16>
    %39 = vector.extract_strided_slice %7 {offsets = [0, 48], sizes = [8, 16], strides = [1, 1]} : vector<8x96xf32> to vector<8x16xf32>
    %40 = arith.truncf %39 : vector<8x16xf32> to vector<8x16xbf16>
    %41 = vector.extract_strided_slice %7 {offsets = [0, 80], sizes = [8, 16], strides = [1, 1]} : vector<8x96xf32> to vector<8x16xf32>
    %42 = arith.truncf %41 : vector<8x16xf32> to vector<8x16xbf16>
    %cst_17 = arith.constant dense<0.000000e+00> : vector<8x8xf32>
    %43 = tpu.matmul %38, %40, %cst_17 {dimension_numbers = #tpu.dot_dimension_numbers<[1], [1], [0], [0], [0, 0, 1, 0], [], []>} : vector<8x16xbf16>, vector<8x16xbf16>, vector<8x8xf32> -> vector<8x8xf32>
    %cst_18 = arith.constant 1.250000e-01 : f32
    %44 = vector.broadcast %cst_18 : f32 to vector<8x8xf32>
    %45 = arith.mulf %43, %44 : vector<8x8xf32>
    %cst_19 = arith.constant dense<0xFF800000> : vector<8xf32>
    %46 = vector.multi_reduction <maximumf>, %45, %cst_19 [1] : vector<8x8xf32> to vector<8xf32>
    %47 = vector.shape_cast %46 : vector<8xf32> to vector<8x1xf32>
    %48 = vector.broadcast %47 : vector<8x1xf32> to vector<8x8xf32>
    %49 = arith.subf %45, %48 : vector<8x8xf32>
    %50 = math.exp %49 : vector<8x8xf32>
    %cst_20 = arith.constant dense<0.000000e+00> : vector<8xf32>
    %51 = vector.multi_reduction <add>, %50, %cst_20 [1] : vector<8x8xf32> to vector<8xf32>
    %52 = vector.shape_cast %51 : vector<8xf32> to vector<8x1xf32>
    %53 = tpu.reciprocal %52 {approx = true} : vector<8x1xf32> -> vector<8x1xf32>
    %54 = vector.broadcast %53 : vector<8x1xf32> to vector<8x8xf32>
    %55 = arith.mulf %50, %54 : vector<8x8xf32>
    %56 = arith.truncf %55 : vector<8x8xf32> to vector<8x8xbf16>
    %cst_21 = arith.constant dense<0.000000e+00> : vector<8x16xf32>
    %57 = tpu.matmul %56, %42, %cst_21 {dimension_numbers = #tpu.dot_dimension_numbers<[1], [0], [0], [1], [0, 0, 1, 1], [], []>} : vector<8x8xbf16>, vector<8x16xbf16>, vector<8x16xf32> -> vector<8x16xf32>
    %58 = arith.truncf %57 : vector<8x16xf32> to vector<8x16xbf16>
    %c16 = arith.constant 16 : index
    %c0_22 = arith.constant 0 : index
    %59 = vector.load %arg5[%c16, %c0_22] : memref<32x32xbf16, #tpu.memory_space<vmem>>, vector<16x32xbf16>
    %cst_23 = arith.constant dense<0.000000e+00> : vector<8x32xf32>
    %60 = tpu.matmul %58, %59, %cst_23 {dimension_numbers = #tpu.dot_dimension_numbers<[1], [0], [0], [1], [0, 0, 1, 1], [], []>} : vector<8x16xbf16>, vector<16x32xbf16>, vector<8x32xf32> -> vector<8x32xf32>
    %61 = arith.addf %36, %60 : vector<8x32xf32>
    %c0_24 = arith.constant 0 : index
    %c0_25 = arith.constant 0 : index
    %62 = vector.load %arg6[%c0_24, %c0_25] : memref<1x32xf32, #tpu.memory_space<vmem>>, vector<1x32xf32>
    %63 = vector.broadcast %62 : vector<1x32xf32> to vector<8x32xf32>
    %64 = arith.addf %61, %63 : vector<8x32xf32>
    %65 = arith.addf %64, %1 : vector<8x32xf32>
    %c0_26 = arith.constant 0 : index
    %c0_27 = arith.constant 0 : index
    %66 = vector.load %arg7[%c0_26, %c0_27] : memref<1x32xf32, #tpu.memory_space<vmem>>, vector<1x32xf32>
    %c0_28 = arith.constant 0 : index
    %c0_29 = arith.constant 0 : index
    %67 = vector.load %arg8[%c0_28, %c0_29] : memref<1x32xf32, #tpu.memory_space<vmem>>, vector<1x32xf32>
    %cst_30 = arith.constant dense<0.000000e+00> : vector<8xf32>
    %68 = vector.multi_reduction <add>, %65, %cst_30 [1] : vector<8x32xf32> to vector<8xf32>
    %69 = vector.shape_cast %68 : vector<8xf32> to vector<8x1xf32>
    %cst_31 = arith.constant 3.200000e+01 : f32
    %70 = vector.broadcast %cst_31 : f32 to vector<8x1xf32>
    %71 = arith.divf %69, %70 : vector<8x1xf32>
    %72 = vector.broadcast %71 : vector<8x1xf32> to vector<8x32xf32>
    %73 = arith.subf %65, %72 : vector<8x32xf32>
    %74 = arith.mulf %73, %73 : vector<8x32xf32>
    %cst_32 = arith.constant dense<0.000000e+00> : vector<8xf32>
    %75 = vector.multi_reduction <add>, %74, %cst_32 [1] : vector<8x32xf32> to vector<8xf32>
    %76 = vector.shape_cast %75 : vector<8xf32> to vector<8x1xf32>
    %cst_33 = arith.constant 3.200000e+01 : f32
    %77 = vector.broadcast %cst_33 : f32 to vector<8x1xf32>
    %78 = arith.divf %76, %77 : vector<8x1xf32>
    %cst_34 = arith.constant 9.99999974E-6 : f32
    %79 = vector.broadcast %cst_34 : f32 to vector<8x1xf32>
    %80 = arith.addf %78, %79 : vector<8x1xf32>
    %81 = math.rsqrt %80 : vector<8x1xf32>
    %82 = vector.broadcast %81 : vector<8x1xf32> to vector<8x32xf32>
    %83 = arith.mulf %73, %82 : vector<8x32xf32>
    %84 = vector.broadcast %66 : vector<1x32xf32> to vector<8x32xf32>
    %85 = arith.mulf %83, %84 : vector<8x32xf32>
    %86 = vector.broadcast %67 : vector<1x32xf32> to vector<8x32xf32>
    %87 = arith.addf %85, %86 : vector<8x32xf32>
    %88 = arith.truncf %87 : vector<8x32xf32> to vector<8x32xbf16>
    %c0_35 = arith.constant 0 : index
    %c0_36 = arith.constant 0 : index
    %89 = vector.load %arg9[%c0_35, %c0_36] : memref<32x64xbf16, #tpu.memory_space<vmem>>, vector<32x64xbf16>
    %cst_37 = arith.constant dense<0.000000e+00> : vector<8x64xf32>
    %90 = tpu.matmul %88, %89, %cst_37 {dimension_numbers = #tpu.dot_dimension_numbers<[1], [0], [0], [1], [0, 0, 1, 1], [], []>} : vector<8x32xbf16>, vector<32x64xbf16>, vector<8x64xf32> -> vector<8x64xf32>
    %c0_38 = arith.constant 0 : index
    %c0_39 = arith.constant 0 : index
    %91 = vector.load %arg10[%c0_38, %c0_39] : memref<1x64xf32, #tpu.memory_space<vmem>>, vector<1x64xf32>
    %92 = vector.broadcast %91 : vector<1x64xf32> to vector<8x64xf32>
    %93 = arith.addf %90, %92 : vector<8x64xf32>
    %cst_40 = arith.constant 5.000000e-01 : f32
    %94 = vector.broadcast %cst_40 : f32 to vector<8x64xf32>
    %95 = arith.mulf %94, %93 : vector<8x64xf32>
    %cst_41 = arith.constant 0.707106769 : f32
    %96 = vector.broadcast %cst_41 : f32 to vector<8x64xf32>
    %97 = arith.mulf %93, %96 : vector<8x64xf32>
    %98 = math.erf %97 : vector<8x64xf32>
    %cst_42 = arith.constant 1.000000e+00 : f32
    %99 = vector.broadcast %cst_42 : f32 to vector<8x64xf32>
    %100 = arith.addf %99, %98 : vector<8x64xf32>
    %101 = arith.mulf %95, %100 : vector<8x64xf32>
    %102 = arith.truncf %101 : vector<8x64xf32> to vector<8x64xbf16>
    %c0_43 = arith.constant 0 : index
    %c0_44 = arith.constant 0 : index
    %103 = vector.load %arg11[%c0_43, %c0_44] : memref<64x32xbf16, #tpu.memory_space<vmem>>, vector<64x32xbf16>
    %cst_45 = arith.constant dense<0.000000e+00> : vector<8x32xf32>
    %104 = tpu.matmul %102, %103, %cst_45 {dimension_numbers = #tpu.dot_dimension_numbers<[1], [0], [0], [1], [0, 0, 1, 1], [], []>} : vector<8x64xbf16>, vector<64x32xbf16>, vector<8x32xf32> -> vector<8x32xf32>
    %c0_46 = arith.constant 0 : index
    %c0_47 = arith.constant 0 : index
    %105 = vector.load %arg12[%c0_46, %c0_47] : memref<1x32xf32, #tpu.memory_space<vmem>>, vector<1x32xf32>
    %106 = vector.broadcast %105 : vector<1x32xf32> to vector<8x32xf32>
    %107 = arith.addf %104, %106 : vector<8x32xf32>
    %108 = arith.addf %107, %87 : vector<8x32xf32>
    %c0_48 = arith.constant 0 : index
    %c0_49 = arith.constant 0 : index
    %109 = vector.load %arg13[%c0_48, %c0_49] : memref<1x32xf32, #tpu.memory_space<vmem>>, vector<1x32xf32>
    %c0_50 = arith.constant 0 : index
    %c0_51 = arith.constant 0 : index
    %110 = vector.load %arg14[%c0_50, %c0_51] : memref<1x32xf32, #tpu.memory_space<vmem>>, vector<1x32xf32>
    %cst_52 = arith.constant dense<0.000000e+00> : vector<8xf32>
    %111 = vector.multi_reduction <add>, %108, %cst_52 [1] : vector<8x32xf32> to vector<8xf32>
    %112 = vector.shape_cast %111 : vector<8xf32> to vector<8x1xf32>
    %cst_53 = arith.constant 3.200000e+01 : f32
    %113 = vector.broadcast %cst_53 : f32 to vector<8x1xf32>
    %114 = arith.divf %112, %113 : vector<8x1xf32>
    %115 = vector.broadcast %114 : vector<8x1xf32> to vector<8x32xf32>
    %116 = arith.subf %108, %115 : vector<8x32xf32>
    %117 = arith.mulf %116, %116 : vector<8x32xf32>
    %cst_54 = arith.constant dense<0.000000e+00> : vector<8xf32>
    %118 = vector.multi_reduction <add>, %117, %cst_54 [1] : vector<8x32xf32> to vector<8xf32>
    %119 = vector.shape_cast %118 : vector<8xf32> to vector<8x1xf32>
    %cst_55 = arith.constant 3.200000e+01 : f32
    %120 = vector.broadcast %cst_55 : f32 to vector<8x1xf32>
    %121 = arith.divf %119, %120 : vector<8x1xf32>
    %cst_56 = arith.constant 9.99999974E-6 : f32
    %122 = vector.broadcast %cst_56 : f32 to vector<8x1xf32>
    %123 = arith.addf %121, %122 : vector<8x1xf32>
    %124 = math.rsqrt %123 : vector<8x1xf32>
    %125 = vector.broadcast %124 : vector<8x1xf32> to vector<8x32xf32>
    %126 = arith.mulf %116, %125 : vector<8x32xf32>
    %127 = vector.broadcast %109 : vector<1x32xf32> to vector<8x32xf32>
    %128 = arith.mulf %126, %127 : vector<8x32xf32>
    %129 = vector.broadcast %110 : vector<1x32xf32> to vector<8x32xf32>
    %130 = arith.addf %128, %129 : vector<8x32xf32>
    %c0_57 = arith.constant 0 : index
    %c0_58 = arith.constant 0 : index
    %c0_59 = arith.constant 0 : index
    %131 = vector.load %arg15[%c0_57, %c0_58, %c0_59] : memref<1x8x32xf32, #tpu.memory_space<vmem>>, vector<1x8x32xf32>
    %132 = vector.shape_cast %131 : vector<1x8x32xf32> to vector<8x32xf32>
    %133 = vector.shape_cast %130 : vector<8x32xf32> to vector<1x8x32xf32>
    tpu.vector_store %arg15[%c0_57, %c0_58, %c0_59], %133 {strides = array<i32>} : memref<1x8x32xf32, #tpu.memory_space<vmem>>, vector<1x8x32xf32>,
    return
  }
  func.func @transform_0(%arg0: i32) -> (i32, i32, i32) {
    %c0_i32 = arith.constant 0 : i32
    %c0_i32_0 = arith.constant 0 : i32
    %c0_i32_1 = arith.constant 0 : i32
    return %arg0, %c0_i32, %c0_i32_0 : i32, i32, i32
  }
  func.func @transform_1(%arg0: i32) -> (i32, i32) {
    %c0_i32 = arith.constant 0 : i32
    %c0_i32_0 = arith.constant 0 : i32
    %c0_i32_1 = arith.constant 0 : i32
    return %c0_i32, %c0_i32_0 : i32, i32
  }
  func.func @transform_2(%arg0: i32) -> (i32, i32) {
    %c0_i32 = arith.constant 0 : i32
    %c0_i32_0 = arith.constant 0 : i32
    %c0_i32_1 = arith.constant 0 : i32
    return %c0_i32, %c0_i32_0 : i32, i32
  }
  func.func @transform_3(%arg0: i32) -> (i32, i32) {
    %c0_i32 = arith.constant 0 : i32
    %c0_i32_0 = arith.constant 0 : i32
    %c0_i32_1 = arith.constant 0 : i32
    return %c0_i32, %c0_i32_0 : i32, i32
  }
  func.func @transform_4(%arg0: i32) -> (i32, i32) {
    %c0_i32 = arith.constant 0 : i32
    %c0_i32_0 = arith.constant 0 : i32
    %c0_i32_1 = arith.constant 0 : i32
    return %c0_i32, %c0_i32_0 : i32, i32
  }
  func.func @transform_5(%arg0: i32) -> (i32, i32) {
    %c0_i32 = arith.constant 0 : i32
    %c0_i32_0 = arith.constant 0 : i32
    %c0_i32_1 = arith.constant 0 : i32
    return %c0_i32, %c0_i32_0 : i32, i32
  }
  func.func @transform_6(%arg0: i32) -> (i32, i32) {
    %c0_i32 = arith.constant 0 : i32
    %c0_i32_0 = arith.constant 0 : i32
    %c0_i32_1 = arith.constant 0 : i32
    return %c0_i32, %c0_i32_0 : i32, i32
  }
  func.func @transform_7(%arg0: i32) -> (i32, i32) {
    %c0_i32 = arith.constant 0 : i32
    %c0_i32_0 = arith.constant 0 : i32
    %c0_i32_1 = arith.constant 0 : i32
    return %c0_i32, %c0_i32_0 : i32, i32
  }
  func.func @transform_8(%arg0: i32) -> (i32, i32) {
    %c0_i32 = arith.constant 0 : i32
    %c0_i32_0 = arith.constant 0 : i32
    %c0_i32_1 = arith.constant 0 : i32
    return %c0_i32, %c0_i32_0 : i32, i32
  }
  func.func @transform_9(%arg0: i32) -> (i32, i32) {
    %c0_i32 = arith.constant 0 : i32
    %c0_i32_0 = arith.constant 0 : i32
    %c0_i32_1 = arith.constant 0 : i32
    return %c0_i32, %c0_i32_0 : i32, i32
  }
  func.func @transform_10(%arg0: i32) -> (i32, i32) {
    %c0_i32 = arith.constant 0 : i32
    %c0_i32_0 = arith.constant 0 : i32
    %c0_i32_1 = arith.constant 0 : i32
    return %c0_i32, %c0_i32_0 : i32, i32
  }
  func.func @transform_11(%arg0: i32) -> (i32, i32) {
    %c0_i32 = arith.constant 0 : i32
    %c0_i32_0 = arith.constant 0 : i32
    %c0_i32_1 = arith.constant 0 : i32
    return %c0_i32, %c0_i32_0 : i32, i32
  }
  func.func @transform_12(%arg0: i32) -> (i32, i32) {
    %c0_i32 = arith.constant 0 : i32
    %c0_i32_0 = arith.constant 0 : i32
    %c0_i32_1 = arith.constant 0 : i32
    return %c0_i32, %c0_i32_0 : i32, i32
  }
  func.func @transform_13(%arg0: i32) -> (i32, i32) {
    %c0_i32 = arith.constant 0 : i32
    %c0_i32_0 = arith.constant 0 : i32
    %c0_i32_1 = arith.constant 0 : i32
    return %c0_i32, %c0_i32_0 : i32, i32
  }
  func.func @transform_14(%arg0: i32) -> (i32, i32, i32) {
    %c0_i32 = arith.constant 0 : i32
    %c0_i32_0 = arith.constant 0 : i32
    %c0_i32_1 = arith.constant 0 : i32
    return %arg0, %c0_i32, %c0_i32_0 : i32, i32, i32
  }
}

</mosaic_0001>

<bundles_post_ra>
// kernel: encoder_forward.4
= control target key start
LH: loop header
LB: loop body
LE: loop exit
PB: predicated region body
PF: predicated region fallthrough
CT: control target
= control target key end

     0   :  { %s1468_s29 = smov 0   ;;  %s1624_s0 = inlined_call_operand.vmem [shape: f32[2,8,32], index: 0, kind: input, shape index: {}]   ;;  %s1625_s1 = inlined_call_operand.vmem [shape: bf16[32,96], index: 1, kind: input, shape index: {}]   ;;  %s1626_s2 = inlined_call_operand.vmem [shape: f32[1,96], index: 2, kind: input, shape index: {}]   ;;  %s1627_s3 = inlined_call_operand.vmem [shape: bf16[32,32], index: 3, kind: input, shape index: {}]   ;;  %s1628_s4 = inlined_call_operand.vmem [shape: bf16[32,32], index: 4, kind: input, shape index: {}]   ;;  %s1629_s5 = inlined_call_operand.vmem [shape: f32[1,32], index: 5, kind: input, shape index: {}]   ;;  %s1630_s6 = inlined_call_operand.vmem [shape: f32[1,32], index: 6, kind: input, shape index: {}]   ;;  %s1631_s7 = inlined_call_operand.vmem [shape: f32[1,32], index: 7, kind: input, shape index: {}]   ;;  %s1632_s8 = inlined_call_operand.vmem [shape: bf16[32,64], index: 8, kind: input, shape index: {}]   ;;  %s1633_s9 = inlined_call_operand.vmem [shape: f32[1,64], index: 9, kind: input, shape index: {}]   ;;  %s1634_s10 = inlined_call_operand.vmem [shape: bf16[64,32], index: 10, kind: input, shape index: {}]   ;;  %s1635_s11 = inlined_call_operand.vmem [shape: f32[1,32], index: 11, kind: input, shape index: {}]   ;;  %s1636_s12 = inlined_call_operand.vmem [shape: f32[1,32], index: 12, kind: input, shape index: {}]   ;;  %s1637_s13 = inlined_call_operand.vmem [shape: f32[1,32], index: 13, kind: input, shape index: {}]   ;;  %s1638_s14 = inlined_call_operand.vmem [shape: f32[2,8,32], index: 14, kind: output, shape index: {}]  }
   0x1 LB: > { %s1200_s30 = sadd.s32 4294967295, %s1384_s29   ;;  %p1204_p0 = scmp.ge.s32.totalorder %s1384_s29, 1  ;;  %s1384_s29 = sphi %s1468_s29, %s24_s29  }
   0x2   : > { %p411_p1 = scmp.lt.s32.totalorder %s1384_s29, 3 }
   0x4   : > { %p412_p2 = pnand %p1204_p0, %p411_p1 }
   0x5   : > { %v1352_v0 = vld [vmem:[%s1625_s1] sm:$0xff] (!%p412_p2)   ;;  %v1386_v1 = vmov (!%p412_p2), 0.0   ;;  %v1353_v2 = vld [vmem:[%s1625_s1 + $0x8] sm:$0xff] (!%p412_p2)   ;;  %vm1387_vm0 = vmmov (!%p412_p2), 0   ;;  %p455_p3 = scmp.lt.s32.totalorder (!%p412_p2), %s1200_s30, 1  ;;  %vm489_vm1 = vcmask (!%p412_p2), 261120  }
   0x6   : > { %415 = sbr.rel (%p412_p2) target bundleno = 3150 (0xc4e), region = 76  ;;  %1265 = vmatprep.subr.bf16.mxu0 (!%p412_p2), %v1386_v1  ;;  %1273 = vmatprep.subr.bf16.mxu1 (!%p412_p2), %v1386_v1  ;;  %v1207_v5 = vld [vmem:[%s1626_s2] ss:$0 sm:$0xff] (!%p412_p2)  ;;  %s1388_s25 = smov (!%p412_p2), 96   ;;  %vm541_vm2 = vcmask (!%p412_p2), 130048   ;;  %vm589_vm3 = vcmask (!%p412_p2), 64512  }
   0x7   : > { %1266 = vmatpush3.bf16.msra.mxu0 (!%p412_p2), %v1352_v0  ;;  %1269 = vmatprep.mubr.msk.bf16.mxu0 (!%p412_p2), %vm1387_vm0, %v1386_v1  ;;  %s1389_s26 = smov (!%p412_p2), 64   ;;  %s1390_s27 = smov (!%p412_p2), 80   ;;  %v1356_v25 = vld [vmem:[%s1628_s4] sm:$0xff] (!%p412_p2)   ;;  %vm607_vm4 = vcmask (!%p412_p2), 1043456   ;;  %v1355_v33 = vld [vmem:[%s1627_s3 + $0x8] sm:$0xff] (!%p412_p2)   ;;  %vm1072_vm5 = vcmask (!%p412_p2), 523264  }
   0x8   : > { %1267 = vmatprep.subr.bf16.mxu0 (!%p412_p2), %v1386_v1  ;;  %1275 = vmatprep.mubr.msk.bf16.mxu1 (!%p412_p2), %vm1387_vm0, %v1386_v1  ;;  %s1391_s28 = smov (!%p412_p2), 112   ;;  %v1354_v31 = vld [vmem:[%s1627_s3] sm:$0xff] (!%p412_p2)   ;;  %v1357_v62 = vld [vmem:[%s1628_s4 + $0x8] sm:$0xff] (!%p412_p2)  }
   0xb   : > { %1268 = vmatpush3.bf16.msra.mxu0 (!%p412_p2), %v1353_v2 }
   0xc   : > { %1279 = vmatprep.subr.bf16.mxu0 (!%p412_p2), %v1386_v1 }
   0xd   : > { %s1640_s30 = smov (!%p455_p3, %s1200_s30), 1 }
   0xe   : > { %s1205_s19 = sshll.u32 %s1640_s30, 3 }
   0xf   : > { %s458_s22 = scalar_lea.vmem %s1624_s0, %s1205_s19 }
  0x10   : > { %v1498_v3 = vld [vmem:[%s458_s22] sm:$0xff]  ;;  %s1392_s22 = smov 48  }
  0x11   : > { %v465_v4 = vpack.c.bf16 %v1498_v3, %v1498_v3 }
  0x13   : > { %1270 = vmatmul.mubr.msk.bf16.vlgmr.msra.gmra.mrb[0].mxu0 %vm489_vm1, %v465_v4 }
  0x14   : > { %1281 = vmatprep.mubr.msk.bf16.mxu0 %vm1387_vm0, %v1386_v1 }
  0xe6   : > { %v527_v6 = vpop.f32.mrb[0].mxu0 }
  0xe7   : > { %v528_v7 = vadd.f32 %v1207_v5, %v527_v6  ;;  %v1271_v8 = vpop.f32.mrb[1].mxu0 }
  0xe8   : > { %v530_v9 = vpop.f32.mrb[2].mxu0 }
  0xe9   : > { %v1508_v10 = vpack.c.bf16 %v528_v7, %v528_v7  ;;  %v1272_v11 = vpop.f32.mrb[3].mxu0 }
  0xeb   : > { %539 = vrot.lane.b32.xlu0 %v1508_v10, %s1388_s25 }
 0x15d   : > { %v540_v12 = vpop.permute.xlu0 %539 }
 0x15e   : > { %v546_v13 = vsel %vm541_vm2, %v540_v12, 0 }
 0x15f   : > { %1274 = vmatpush3.bf16.xpose.msra.mxu1 %v546_v13  ;;  %v1222_v13 = vld [vmem:[%s1629_s5] ss:$0 sm:$0xff] }
 0x160   : > { %1285 = vmatprep.subr.bf16.mxu1 %v1386_v1 }
 0x166   : > { %1276 = vmatmul.mubr.msk.bf16.vlgmr.msra.gmra.mrb[0].mxu1 %vm541_vm2, %v1508_v10 }
 0x167   : > { %1287 = vmatprep.mubr.msk.bf16.mxu1 %vm1387_vm0, %v1386_v1  ;;  %1286 = vmatpush3.bf16.msra.mxu1 %v1356_v25 }
 0x168   : > { %1299 = vmatprep.subr.bf16.mxu1 %v1386_v1 }
 0x239   : > { %v582_v14 = vpop.f32.mrb[0].mxu1 }
 0x23a   : > { %v588_v15 = vmul.f32 0.125, %v582_v14  ;;  %v1277_v16 = vpop.f32.mrb[1].mxu1 }
 0x23b   : > { %v585_v17 = vpop.f32.mrb[2].mxu1 }
 0x23c   : > { %v1278_v18 = vpop.f32.mrb[3].mxu1  ;;  %v590_v19 = vsel %vm589_vm3, %v588_v15, -inf }
 0x23d   : > { %591 = vmax.xlane.f32.xlu0 %v590_v19 }
 0x2ca   : > { %v592_v20 = vpop.xlane.xlu0 %591 }
 0x2cb   : > { %v593_v21 = vsub.f32 %v588_v15, %v592_v20 }
 0x2cd   : > { %v594_v22 = vmul.f32 1.442695, %v593_v21 }
 0x2cf   : > { %1364 = vpow2.f32 %v594_v22 }
 0x2d9   : > { %v1365_v23 = vpop.eup %1364 }
 0x2da   : > { %v596_v24 = vsel %vm589_vm3, %v1365_v23, 0.0 }
 0x2db   : > { %597 = vadd.xlane.f32.xlu1 %v596_v24 }
 0x2ec   : > { %602 = vrot.lane.b32.xlu1 %v1508_v10, %s1389_s26 }
 0x2f0   : > { %759 = vrot.lane.b32.xlu1 %v1508_v10, %s1390_s27  ;;  %s462_s27 = scalar_lea.vmem %s1638_s14, %s1205_s19 }
 0x2f4   : > { %757 = vrot.lane.b32.xlu1 %v1508_v10, %s1391_s28 }
 0x368   : > { %v598_v26 = vpop.xlane.xlu1 %597 }
 0x369   : > { %1366 = vrcp.f32 %v598_v26  ;;  %v1358_v26 = vld [vmem:[%s1632_s8] sm:$0xff]  }
 0x36c   : > { %v603_v27 = vpop.permute.xlu1 %602 }
 0x36d   : > { %v609_v28 = vsel %vm607_vm4, %v603_v27, 0  ;;  %v1359_v27 = vld [vmem:[%s1632_s8 + $0x8] sm:$0xff]  }
 0x36e   : > { %1280 = vmatpush3.bf16.msra.mxu0 %v609_v28 }
 0x36f   : > { %1291 = vmatprep.subr.bf16.mxu0 %v1386_v1 }
 0x370   : > { %v760_v34 = vpop.permute.xlu1 %759 }
 0x371   : > { %v765_v39 = vsel %vm541_vm2, %v760_v34, 0 }
 0x373   : > { %v1367_v29 = vpop.eup %1366 }
 0x374   : > { %v600_v30 = vmul.f32 %v1367_v29, %v1365_v23  ;;  %v758_v43 = vpop.permute.xlu1 %757 }
 0x376   : > { %v601_v32 = vpack.c.bf16 %v600_v30, %v600_v30 }
 0x378   : > { %1282 = vmatmul.mubr.msk.bf16.vlgmr.msra.gmra.mrb[4].mxu0 %vm589_vm3, %v601_v32 }
 0x379   : > { %1292 = vmatpush3.bf16.msra.mxu0 %v1354_v31  ;;  %1295 = vmatprep.mubr.msk.bf16.mxu0 %vm1387_vm0, %v1386_v1  ;;  %v1223_v31 = vld [vmem:[%s1630_s6] ss:$0 sm:$0xff] }
 0x37a   : > { %1293 = vmatprep.subr.bf16.mxu0 %v1386_v1 }
 0x37d   : > { %1294 = vmatpush3.bf16.msra.mxu0 %v1355_v33  ;;  %v1224_v33 = vld [vmem:[%s1631_s7] ss:$0 sm:$0xff] }
 0x37e   : > { %1305 = vmatprep.subr.bf16.mxu0 %v1386_v1 }
 0x380   : > { %1296 = vmatmul.mubr.msk.bf16.vlgmr.msra.gmra.mrb[8].mxu0 %vm489_vm1, %v1508_v10 }
 0x381   : > { %1307 = vmatprep.mubr.msk.bf16.mxu0 %vm1387_vm0, %v1386_v1 }
 0x44b   : > { %v645_v35 = vpop.f32.mrb[4].mxu0 }
 0x44c   : > { %v651_v36 = vpack.c.bf16 %v645_v35, %v645_v35  ;;  %v1283_v37 = vpop.f32.mrb[5].mxu0 }
 0x44d   : > { %v648_v38 = vpop.f32.mrb[6].mxu0  ;;  %v1360_v37 = vld [vmem:[%s1634_s10] sm:$0xff]  }
 0x44e   : > { %v1284_v40 = vpop.f32.mrb[7].mxu0  ;;  %1288 = vmatmul.mubr.msk.bf16.vlgmr.msra.gmra.mrb[4].mxu1 %vm541_vm2, %v651_v36  ;;  %v1361_v38 = vld [vmem:[%s1634_s10 + $0x8] sm:$0xff]  }
 0x44f   : > { %1300 = vmatpush3.bf16.xpose.msra.mxu1 %v765_v39  ;;  %1301 = vmatprep.mubr.msk.bf16.mxu1 %vm1387_vm0, %v1386_v1  ;;  %v1362_v39 = vld [vmem:[%s1634_s10 + $0x10] sm:$0xff]   ;;  %v1363_v40 = vld [vmem:[%s1634_s10 + $0x18] sm:$0xff]  }
 0x450   : > { %1311 = vmatprep.subr.bf16.mxu1 %v1386_v1 }
 0x453   : > { %v751_v41 = vpop.f32.mrb[8].mxu0 }
 0x454   : > { %v1297_v42 = vpop.f32.mrb[9].mxu0 }
 0x455   : > { %v754_v44 = vpop.f32.mrb[10].mxu0 }
 0x456   : > { %v1298_v45 = vpop.f32.mrb[11].mxu0  ;;  %1302 = vmatmul.mubr.msk.bf16.vlgmr.msra.gmra.mrb[8].mxu1 %vm541_vm2, %v758_v43 }
 0x457   : > { %1313 = vmatprep.mubr.msk.bf16.mxu1 %vm1387_vm0, %v1386_v1  ;;  %1312 = vmatpush3.bf16.msra.mxu1 %v1357_v62 }
 0x458   : > { %1325 = vmatprep.subr.bf16.mxu1 %v1386_v1 }
 0x521   : > { %v697_v46 = vpop.f32.mrb[4].mxu1 }
 0x522   : > { %v752_v47 = vadd.f32 %v751_v41, %v697_v46  ;;  %v1289_v48 = vpop.f32.mrb[5].mxu1  ;;  %v1225_v41 = vld [vmem:[%s1633_s9] ss:$0 sm:$0xff] }
 0x523   : > { %v700_v49 = vpop.f32.mrb[6].mxu1 }
 0x524   : > { %v1290_v50 = vpop.f32.mrb[7].mxu1 }
 0x529   : > { %v801_v51 = vpop.f32.mrb[8].mxu1 }
 0x52a   : > { %v807_v52 = vmul.f32 0.125, %v801_v51  ;;  %v1303_v53 = vpop.f32.mrb[9].mxu1 }
 0x52b   : > { %v804_v54 = vpop.f32.mrb[10].mxu1 }
 0x52c   : > { %v1304_v55 = vpop.f32.mrb[11].mxu1  ;;  %v808_v56 = vsel %vm589_vm3, %v807_v52, -inf }
 0x52d   : > { %809 = vmax.xlane.f32.xlu1 %v808_v56 }
 0x5ba   : > { %v810_v57 = vpop.xlane.xlu1 %809 }
 0x5bb   : > { %v811_v58 = vsub.f32 %v807_v52, %v810_v57  ;;  %v1229_v52 = vld [vmem:[%s1635_s11] ss:$0 sm:$0xff] }
 0x5bd   : > { %v812_v59 = vmul.f32 1.442695, %v811_v58 }
 0x5bf   : > { %1368 = vpow2.f32 %v812_v59 }
 0x5c9   : > { %v1369_v60 = vpop.eup %1368 }
 0x5ca   : > { %v814_v61 = vsel %vm589_vm3, %v1369_v60, 0.0 }
 0x5cb   : > { %815 = vadd.xlane.f32.xlu0 %v814_v61 }
 0x5e1   : > { %820 = vrot.lane.b32.xlu0 %v1508_v10, %s1392_s22 }
 0x658   : > { %v816_v63 = vpop.xlane.xlu0 %815 }
 0x659   : > { %1370 = vrcp.f32 %v816_v63 }
 0x65c   : > { %v821_v0 = vpop.permute.xlu0 %820 }
 0x65d   : > { %v826_v2 = vsel %vm607_vm4, %v821_v0, 0 }
 0x65e   : > { %1306 = vmatpush3.bf16.msra.mxu0 %v826_v2 }
 0x65f   : > { %1317 = vmatprep.subr.bf16.mxu0 %v1386_v1 }
 0x663   : > { %v1371_v4 = vpop.eup %1370 }
 0x664   : > { %v818_v5 = vmul.f32 %v1371_v4, %v1369_v60 }
 0x666   : > { %v819_v6 = vpack.c.bf16 %v818_v5, %v818_v5 }
 0x668   : > { %1308 = vmatmul.mubr.msk.bf16.vlgmr.msra.gmra.mrb[12].mxu0 %vm589_vm3, %v819_v6 }
 0x669   : > { %1321 = vmatprep.mubr.msk.bf16.mxu0 %vm1387_vm0, %v1386_v1  ;;  %1318 = vmatpush3.bf16.msra.mxu0 %v1358_v26 }
 0x66a   : > { %1319 = vmatprep.subr.bf16.mxu0 %v1386_v1 }
 0x66d   : > { %1320 = vmatpush3.bf16.msra.mxu0 %v1359_v27 }
 0x73b   : > { %v862_v7 = vpop.f32.mrb[12].mxu0 }
 0x73c   : > { %v868_v8 = vpack.c.bf16 %v862_v7, %v862_v7  ;;  %v1309_v9 = vpop.f32.mrb[13].mxu0  ;;  %v1235_v7 = vld [vmem:[%s1636_s12] ss:$0 sm:$0xff] }
 0x73d   : > { %v865_v10 = vpop.f32.mrb[14].mxu0  ;;  %v1236_v9 = vld [vmem:[%s1637_s13] ss:$0 sm:$0xff] }
 0x73e   : > { %v1310_v11 = vpop.f32.mrb[15].mxu0  ;;  %1314 = vmatmul.mubr.msk.bf16.vlgmr.msra.gmra.mrb[12].mxu1 %vm541_vm2, %v868_v8 }
 0x73f   : > { %1333 = vmatprep.mubr.msk.bf16.mxu1 %vm1387_vm0, %v1386_v1  ;;  %1326 = vmatpush3.bf16.msra.mxu1 %v1360_v37 }
 0x740   : > { %1327 = vmatprep.subr.bf16.mxu1 %v1386_v1 }
 0x743   : > { %1328 = vmatpush3.bf16.msra.mxu1 %v1361_v38 }
 0x744   : > { %1329 = vmatprep.subr.bf16.mxu1 %v1386_v1 }
 0x747   : > { %1330 = vmatpush3.bf16.msra.mxu1 %v1362_v39 }
 0x748   : > { %1331 = vmatprep.subr.bf16.mxu1 %v1386_v1 }
 0x74b   : > { %1332 = vmatpush3.bf16.msra.mxu1 %v1363_v40 }
 0x811   : > { %v914_v12 = vpop.f32.mrb[12].mxu1 }
 0x812   : > { %v920_v14 = vadd.f32 %v914_v12, %v752_v47  ;;  %v1315_v15 = vpop.f32.mrb[13].mxu1 }
 0x813   : > { %v917_v16 = vpop.f32.mrb[14].mxu1 }
 0x814   : > { %v928_v17 = vadd.f32 %v1222_v13, %v920_v14  ;;  %v1316_v18 = vpop.f32.mrb[15].mxu1 }
 0x816   : > { %v929_v19 = vadd.f32 %v928_v17, %v1498_v3 }
 0x818   : > { %v932_v20 = vsel %vm489_vm1, %v929_v19, 0.0 }
 0x819   : > { %933 = vadd.xlane.f32.xlu0 %v932_v20 }
 0x8a6   : > { %v934_v21 = vpop.xlane.xlu0 %933 }
 0x8a7   : > { %v936_v22 = vmul.f32 0.03125, %v934_v21 }
 0x8a9   : > { %v937_v23 = vsub.f32 %v929_v19, %v936_v22 }
 0x8ab   : > { %v938_v24 = vmul.f32 %v937_v23, %v937_v23 }
 0x8ad   : > { %v939_v25 = vsel %vm489_vm1, %v938_v24, 0.0 }
 0x8ae   : > { %940 = vadd.xlane.f32.xlu1 %v939_v25 }
 0x93b   : > { %v941_v3 = vpop.xlane.xlu1 %940 }
 0x93c   : > { %v942_v28 = vmul.f32 0.03125, %v941_v3 }
 0x93e   : > { %v943_v29 = vadd.f32 1e-05, %v942_v28 }
 0x940   : > { %1372 = vrsqrt.f32 %v943_v29 }
 0x94a   : > { %v1373_v30 = vpop.eup %1372 }
 0x94b   : > { %v945_v32 = vmul.f32 %v1373_v30, %v937_v23 }
 0x94d   : > { %v952_v34 = vmul.f32 %v1223_v31, %v945_v32 }
 0x94f   : > { %v959_v35 = vadd.f32 %v1224_v33, %v952_v34 }
 0x951   : > { %v960_v36 = vpack.c.bf16 %v959_v35, %v959_v35 }
 0x953   : > { %1322 = vmatmul.mubr.msk.bf16.vlgmr.msra.gmra.mrb[16].mxu0 %vm489_vm1, %v960_v36 }
 0xa26   : > { %v1021_v42 = vpop.f32.mrb[16].mxu0 }
 0xa27   : > { %v1022_v43 = vadd.f32 %v1225_v41, %v1021_v42  ;;  %v1323_v44 = vpop.f32.mrb[17].mxu0 }
 0xa28   : > { %v1024_v45 = vpop.f32.mrb[18].mxu0 }
 0xa29   : > { %v1028_v46 = vmul.f32 0.70710677, %v1022_v43  ;;  %v1324_v47 = vpop.f32.mrb[19].mxu0  ;;  %v1027_v49 = vmul.f32 0.5, %v1022_v43 }
 0xa2b   : > { %1374 = verf.f32 %v1028_v46 }
 0xa35   : > { %v1375_v48 = vpop.eup %1374 }
 0xa36   : > { %v1030_v50 = vadd.f32 1.0, %v1375_v48 }
 0xa38   : > { %v1031_v1 = vmul.f32 %v1030_v50, %v1027_v49 }
 0xa3a   : > { %v1032_v51 = vpack.c.bf16 %v1031_v1, %v1031_v1 }
 0xa3c   : > { %1334 = vmatmul.mubr.msk.bf16.vlgmr.msra.gmra.mrb[16].mxu1 %vm1072_vm5, %v1032_v51 }
 0xb0f   : > { %v1110_v53 = vpop.f32.mrb[16].mxu1 }
 0xb10   : > { %v1111_v54 = vadd.f32 %v1229_v52, %v1110_v53  ;;  %v1335_v55 = vpop.f32.mrb[17].mxu1 }
 0xb11   : > { %v1113_v56 = vpop.f32.mrb[18].mxu1 }
 0xb12   : > { %v1336_v57 = vpop.f32.mrb[19].mxu1  ;;  %v1116_v58 = vadd.f32 %v1111_v54, %v959_v35 }
 0xb14   : > { %v1119_v59 = vsel %vm489_vm1, %v1116_v58, 0.0 }
 0xb15   : > { %1120 = vadd.xlane.f32.xlu1 %v1119_v59 }
 0xba2   : > { %v1121_v60 = vpop.xlane.xlu1 %1120 }
 0xba3   : > { %v1122_v61 = vmul.f32 0.03125, %v1121_v60 }
 0xba5   : > { %v1123_v62 = vsub.f32 %v1116_v58, %v1122_v61 }
 0xba7   : > { %v1124_v63 = vmul.f32 %v1123_v62, %v1123_v62 }
 0xba9   : > { %v1125_v0 = vsel %vm489_vm1, %v1124_v63, 0.0 }
 0xbaa   : > { %1126 = vadd.xlane.f32.xlu1 %v1125_v0 }
 0xc37   : > { %v1127_v2 = vpop.xlane.xlu1 %1126 }
 0xc38   : > { %v1128_v4 = vmul.f32 0.03125, %v1127_v2 }
 0xc3a   : > { %v1129_v5 = vadd.f32 1e-05, %v1128_v4 }
 0xc3c   : > { %1376 = vrsqrt.f32 %v1129_v5 }
 0xc46   : > { %v1377_v6 = vpop.eup %1376 }
 0xc47   : > { %v1131_v8 = vmul.f32 %v1377_v6, %v1123_v62 }
 0xc49   : > { %v1138_v10 = vmul.f32 %v1235_v7, %v1131_v8 }
 0xc4b   : > { %v1145_v11 = vadd.f32 %v1236_v9, %v1138_v10 }
 0xc4d   : > { %1146 = vst.msk [vmem:[%s462_s27] sm:$0xff] %vm489_vm1, %v1145_v11 }
 0xc4e PF: > { %s24_s29 = sadd.s32 1, %s1384_s29  }
 0xc4f   : > { %p21_p4 = scmp.ge.s32.totalorder %s24_s29, 4  }
 0xc51   :  { %23 = sbr.rel (!%p21_p4) target bundleno = 1 (0x1), region = 106 }

// kernel: encoder_forward.3
= control target key start
LH: loop header
LB: loop body
LE: loop exit
PB: predicated region body
PF: predicated region fallthrough
CT: control target
= control target key end

     0   :  { %s1249_s25 = smov 0   ;;  %s1455_s0 = inlined_call_operand.vmem [shape: f32[2,8,32], index: 0, kind: input, shape index: {}]   ;;  %s1456_s1 = inlined_call_operand.vmem [shape: f32[8,32], index: 1, kind: input, shape index: {}]   ;;  %s1457_s2 = inlined_call_operand.vmem [shape: bf16[160,32], index: 2, kind: input, shape index: {}]   ;;  %s1458_s3 = inlined_call_operand.vmem [shape: f32[1,32], index: 3, kind: input, shape index: {}]   ;;  %s1459_s4 = inlined_call_operand.vmem [shape: f32[1,32], index: 4, kind: input, shape index: {}]   ;;  %s1460_s5 = inlined_call_operand.vmem [shape: bf16[160,32], index: 5, kind: input, shape index: {}]   ;;  %s1461_s6 = inlined_call_operand.vmem [shape: f32[1,32], index: 6, kind: input, shape index: {}]   ;;  %s1462_s7 = inlined_call_operand.vmem [shape: f32[1,32], index: 7, kind: input, shape index: {}]   ;;  %s1463_s8 = inlined_call_operand.vmem [shape: bf16[160,32], index: 8, kind: input, shape index: {}]   ;;  %s1464_s9 = inlined_call_operand.vmem [shape: f32[1,32], index: 9, kind: input, shape index: {}]   ;;  %s1465_s10 = inlined_call_operand.vmem [shape: f32[1,32], index: 10, kind: input, shape index: {}]   ;;  %s1466_s11 = inlined_call_operand.vmem [shape: bf16[32,32], index: 11, kind: input, shape index: {}]   ;;  %s1467_s12 = inlined_call_operand.vmem [shape: f32[1,32], index: 12, kind: input, shape index: {}]   ;;  %s1468_s13 = inlined_call_operand.vmem [shape: f32[2,8,32], index: 13, kind: output, shape index: {}]  }
   0x1 LB: > { %s1056_s26 = sadd.s32 4294967295, %s1171_s25   ;;  %p1060_p0 = scmp.ge.s32.totalorder %s1171_s25, 1  ;;  %s1171_s25 = sphi %s1249_s25, %s23_s25  }
   0x2   : > { %p386_p1 = scmp.lt.s32.totalorder %s1171_s25, 3 }
   0x4   : > { %p387_p2 = pnand %p1060_p0, %p386_p1 }
   0x5   : > { %p428_p3 = scmp.lt.s32.totalorder (!%p387_p2), %s1056_s26, 1  ;;  %vm437_vm0 = vcmask (!%p387_p2), 261120   ;;  %vm439_vm1 = vcmask (!%p387_p2), 257024   ;;  %v1173_v0 = vmov (!%p387_p2), 0.0   ;;  %v1174_v1 = vmov (!%p387_p2), 0   ;;  %v1133_v2 = vld [vmem:[%s1457_s2] sm:$0xff] (!%p387_p2)  }
   0x6   : > { %390 = sbr.rel (%p387_p2) target bundleno = 1283 (0x503), region = 72  ;;  %438 = vst.msk [vmem:[#allocation2] sm:$0xff] (!%p387_p2), %vm437_vm0, %v1173_v0  ;;  %550 = vmatprep.subr.bf16.mxu0 (!%p387_p2), %v1174_v1  ;;  %713 = vmatprep.subr.bf16.mxu1 (!%p387_p2), %v1174_v1  ;;  %v1134_v3 = vld [vmem:[%s1457_s2 + $0x8] sm:$0xff] (!%p387_p2)   ;;  %v1135_v5 = vld [vmem:[%s1457_s2 + $0x10] sm:$0xff] (!%p387_p2)   ;;  %v1136_v6 = vld [vmem:[%s1457_s2 + $0x18] sm:$0xff] (!%p387_p2)   ;;  %s1175_s24 = smov (!%p387_p2), 32  }
   0x7   : > { %440 = vst.msk [vmem:[#allocation2 + $0x8] sm:$0xf] (!%p387_p2), %vm439_vm1, %v1173_v0  ;;  %551 = vmatpush1.bf16.msra.mxu0 (!%p387_p2), %v1133_v2  ;;  %v1137_v9 = vld [vmem:[%s1457_s2 + $0x20] sm:$0xff] (!%p387_p2)   ;;  %s1176_s27 = smov (!%p387_p2), 96   ;;  %v1138_v13 = vld [vmem:[%s1457_s2 + $0x28] sm:$0xff] (!%p387_p2)   ;;  %s1177_s14 = smov (!%p387_p2), 64  }
   0x8   : > { %552 = vmatprep.subr.bf16.mxu0 (!%p387_p2), %v1174_v1  ;;  %v1139_v14 = vld [vmem:[%s1457_s2 + $0x30] sm:$0xff] (!%p387_p2)   ;;  %v1140_v15 = vld [vmem:[%s1457_s2 + $0x38] sm:$0xff] (!%p387_p2)   ;;  %v1141_v16 = vld [vmem:[%s1457_s2 + $0x40] sm:$0xff] (!%p387_p2)   ;;  %vm461_vm2 = vcmask (!%p387_p2), 523264   ;;  %vm463_vm3 = vcmask (!%p387_p2), 785408   ;;  %vm1178_vm4 = vmmov (!%p387_p2), 0  }
   0x9   : > { %v1142_v17 = vld [vmem:[%s1457_s2 + $0x48] sm:$0xff] (!%p387_p2)   ;;  %v1143_v26 = vld [vmem:[%s1460_s5] sm:$0xff] (!%p387_p2)   ;;  %v1145_v28 = vld [vmem:[%s1460_s5 + $0x10] sm:$0xff] (!%p387_p2)  }
   0xa   : > { %714 = vmatpush1.bf16.msra.mxu1 (!%p387_p2), %v1143_v26  ;;  %v1144_v27 = vld [vmem:[%s1460_s5 + $0x8] sm:$0xff] (!%p387_p2)   ;;  %v1146_v29 = vld [vmem:[%s1460_s5 + $0x18] sm:$0xff] (!%p387_p2)   ;;  %v1147_v30 = vld [vmem:[%s1460_s5 + $0x20] sm:$0xff] (!%p387_p2)  }
   0xb   : > { %553 = vmatpush1.bf16.msra.mxu0 (!%p387_p2), %v1134_v3  ;;  %715 = vmatprep.subr.bf16.mxu1 (!%p387_p2), %v1174_v1  ;;  %v1148_v31 = vld [vmem:[%s1460_s5 + $0x28] sm:$0xff] (!%p387_p2)   ;;  %v1149_v32 = vld [vmem:[%s1460_s5 + $0x30] sm:$0xff] (!%p387_p2)   ;;  %v1150_v33 = vld [vmem:[%s1460_s5 + $0x38] sm:$0xff] (!%p387_p2)  }
   0xc   : > { %554 = vmatprep.subr.bf16.mxu0 (!%p387_p2), %v1174_v1  ;;  %v1074_v34 = vld [vmem:[%s1458_s3] ss:$0 sm:$0xff] (!%p387_p2)  ;;  %v1152_v44 = vld [vmem:[%s1460_s5 + $0x48] sm:$0xff] (!%p387_p2)   ;;  %v1155_v60 = vld [vmem:[%s1463_s8 + $0x10] sm:$0xff] (!%p387_p2)  }
   0xd   : > { %s1470_s26 = smov (!%p428_p3, %s1056_s26), 1  ;;  %v1075_v36 = vld [vmem:[%s1459_s4] ss:$0 sm:$0xff]  ;;  %v1154_v59 = vld [vmem:[%s1463_s8 + $0x8] sm:$0xff]   ;;  %v1156_v61 = vld [vmem:[%s1463_s8 + $0x18] sm:$0xff]  }
   0xe   : > { %s1061_s29 = sshll.u32 %s1470_s26, 3  ;;  %716 = vmatpush1.bf16.msra.mxu1 %v1144_v27  ;;  %v1151_v39 = vld [vmem:[%s1460_s5 + $0x40] sm:$0xff]   ;;  %v1158_v63 = vld [vmem:[%s1463_s8 + $0x28] sm:$0xff]   ;;  %v1159_v2 = vld [vmem:[%s1463_s8 + $0x30] sm:$0xff]  }
   0xf   : > { %s431_s17 = scalar_lea.vmem %s1455_s0, %s1061_s29  ;;  %555 = vmatpush1.bf16.msra.mxu0 %v1135_v5  ;;  %717 = vmatprep.subr.bf16.mxu1 %v1174_v1  ;;  %v1153_v58 = vld [vmem:[%s1463_s8] sm:$0xff]   ;;  %v1160_v3 = vld [vmem:[%s1463_s8 + $0x38] sm:$0xff]  }
  0x10   : > { %v441_v4 = vld [vmem:[%s431_s17] sm:$0xff]  ;;  %556 = vmatprep.subr.bf16.mxu0 %v1174_v1 }
  0x11   : > { %442 = vst.msk [vmem:[#allocation2 + $0x2] sm:$0xff] %vm437_vm0, %v441_v4  ;;  %v1157_v62 = vld [vmem:[%s1463_s8 + $0x20] sm:$0xff]  }
  0x12   : > { %718 = vmatpush1.bf16.msra.mxu1 %v1145_v28  ;;  %v1087_v4 = vld [vmem:[%s1461_s6] ss:$0 sm:$0xff]  ;;  %v1164_v28 = vld [vmem:[%s1466_s11 + $0x8] sm:$0xff]  }
  0x13   : > { %557 = vmatpush1.bf16.msra.mxu0 %v1136_v6  ;;  %719 = vmatprep.subr.bf16.mxu1 %v1174_v1  ;;  %v1088_v6 = vld [vmem:[%s1462_s7] ss:$0 sm:$0xff] }
  0x14   : > { %558 = vmatprep.subr.bf16.mxu0 %v1174_v1  ;;  %v1163_v27 = vld [vmem:[%s1466_s11] sm:$0xff]  }
  0x16   : > { %720 = vmatpush1.bf16.msra.mxu1 %v1146_v29  ;;  %v1100_v29 = vld [vmem:[%s1464_s9] ss:$0 sm:$0xff] }
  0x17   : > { %559 = vmatpush1.bf16.msra.mxu0 %v1137_v9  ;;  %721 = vmatprep.subr.bf16.mxu1 %v1174_v1  ;;  %v1161_v9 = vld [vmem:[%s1463_s8 + $0x40] sm:$0xff]  }
  0x18   : > { %v444_v7 = vld [vmem:[#allocation2 + $0x1] sm:$0xff]  ;;  %560 = vmatprep.subr.bf16.mxu0 %v1174_v1 }
  0x19   : > { %v446_v8 = vld [vmem:[#allocation2 + $0x3] sm:$0xff]  ;;  %449 = vrot.lane.b32.xlu0 %v444_v7, %s1175_s24 }
  0x1a   : > { %v445_v10 = vld [vmem:[#allocation2 + $0x2] sm:$0xff]  ;;  %457 = vrot.lane.b32.xlu1 %v446_v8, %s1176_s27  ;;  %722 = vmatpush1.bf16.msra.mxu1 %v1147_v30 }
  0x1b   : > { %v447_v11 = vld [vmem:[#allocation2 + $0x4] sm:$0xff]  ;;  %561 = vmatpush1.bf16.msra.mxu0 %v1138_v13  ;;  %723 = vmatprep.subr.bf16.mxu1 %v1174_v1 }
  0x1c   : > { %v466_v12 = vpack.c.bf16 %v447_v11, %v447_v11  ;;  %562 = vmatprep.subr.bf16.mxu0 %v1174_v1  ;;  %v443_v19 = vld [vmem:[#allocation2] sm:$0xff] }
  0x1d   : > { %453 = vrot.lane.b32.xlu0 %v445_v10, %s1177_s14 }
  0x1e   : > { %1073 = vmatprep.mubr.msk.bf16.mxu0 %vm437_vm0, %v466_v12  ;;  %724 = vmatpush1.bf16.msra.mxu1 %v1148_v31  ;;  %v1101_v31 = vld [vmem:[%s1465_s10] ss:$0 sm:$0xff] }
  0x1f   : > { %563 = vmatpush1.bf16.msra.mxu0 %v1139_v14  ;;  %725 = vmatprep.subr.bf16.mxu1 %v1174_v1  ;;  %v1162_v14 = vld [vmem:[%s1463_s8 + $0x48] sm:$0xff]  }
  0x20   : > { %564 = vmatprep.subr.bf16.mxu0 %v1174_v1 }
  0x22   : > { %726 = vmatpush1.bf16.msra.mxu1 %v1149_v32 }
  0x23   : > { %565 = vmatpush1.bf16.msra.mxu0 %v1140_v15  ;;  %727 = vmatprep.subr.bf16.mxu1 %v1174_v1 }
  0x24   : > { %566 = vmatprep.subr.bf16.mxu0 %v1174_v1 }
  0x26   : > { %728 = vmatpush1.bf16.msra.mxu1 %v1150_v33 }
  0x27   : > { %567 = vmatpush1.bf16.msra.mxu0 %v1141_v16  ;;  %729 = vmatprep.subr.bf16.mxu1 %v1174_v1 }
  0x28   : > { %568 = vmatprep.subr.bf16.mxu0 %v1174_v1 }
  0x2a   : > { %730 = vmatpush1.bf16.msra.mxu1 %v1151_v39 }
  0x2b   : > { %569 = vmatpush1.bf16.msra.mxu0 %v1142_v17  ;;  %731 = vmatprep.subr.bf16.mxu1 %v1174_v1 }
  0x2c   : > { %876 = vmatprep.subr.bf16.mxu0 %v1174_v1 }
  0x2e   : > { %732 = vmatpush1.bf16.msra.mxu1 %v1152_v44 }
  0x2f   : > { %1111 = vmatprep.subr.bf16.mxu1 %v1173_v0 }
  0x8b   : > { %v450_v18 = vpop.permute.xlu0 %449 }
  0x8c   : > { %v458_v20 = vpop.permute.xlu1 %457  ;;  %v460_v21 = vsel %vm437_vm0, %v443_v19, %v450_v18 }
  0x8f   : > { %v454_v22 = vpop.permute.xlu0 %453 }
  0x90   : > { %v462_v23 = vsel %vm461_vm2, %v460_v21, %v454_v22 }
  0x91   : > { %v464_v24 = vsel %vm463_vm3, %v462_v23, %v458_v20 }
  0x92   : > { %v465_v25 = vpack.c.bf16 %v464_v24, %v464_v24 }
  0x94   : > { %583 = vmatmul.mubr.bf16.vlgmr.msra.gmra.mrb[0].mxu0 %v465_v25 }
  0x95   : > { %877 = vmatpush1.bf16.msra.mxu0 %v1153_v58 }
  0x96   : > { %878 = vmatprep.subr.bf16.mxu0 %v1174_v1 }
  0x99   : > { %879 = vmatpush1.bf16.msra.mxu0 %v1154_v59 }
  0x9a   : > { %880 = vmatprep.subr.bf16.mxu0 %v1174_v1 }
  0x9d   : > { %881 = vmatpush1.bf16.msra.mxu0 %v1155_v60 }
  0x9e   : > { %882 = vmatprep.subr.bf16.mxu0 %v1174_v1 }
  0xa1   : > { %883 = vmatpush1.bf16.msra.mxu0 %v1156_v61 }
  0xa2   : > { %884 = vmatprep.subr.bf16.mxu0 %v1174_v1 }
  0xa5   : > { %885 = vmatpush1.bf16.msra.mxu0 %v1157_v62 }
  0xa6   : > { %886 = vmatprep.subr.bf16.mxu0 %v1174_v1 }
  0xa9   : > { %887 = vmatpush1.bf16.msra.mxu0 %v1158_v63 }
  0xaa   : > { %888 = vmatprep.subr.bf16.mxu0 %v1174_v1 }
  0xad   : > { %889 = vmatpush1.bf16.msra.mxu0 %v1159_v2 }
  0xae   : > { %890 = vmatprep.subr.bf16.mxu0 %v1174_v1 }
  0xb1   : > { %891 = vmatpush1.bf16.msra.mxu0 %v1160_v3 }
  0xb2   : > { %892 = vmatprep.subr.bf16.mxu0 %v1174_v1 }
  0xb5   : > { %893 = vmatpush1.bf16.msra.mxu0 %v1161_v9 }
  0xb6   : > { %894 = vmatprep.subr.bf16.mxu0 %v1174_v1 }
  0xb9   : > { %895 = vmatpush1.bf16.msra.mxu0 %v1162_v14 }
 0x167   : > { %v584_v35 = vpop.f32.mrb[0].mxu0 }
 0x168   : > { %v597_v37 = vmul.f32 %v1074_v34, %v584_v35  ;;  %v586_v38 = vpop.f32.mrb[1].mxu0 }
 0x169   : > { %v587_v40 = vpop.f32.mrb[2].mxu0 }
 0x16a   : > { %v605_v41 = vadd.f32 %v1075_v36, %v597_v37  ;;  %v588_v42 = vpop.f32.mrb[3].mxu0  ;;  %v1000_v40 = vld [vmem:[%s1456_s1] sm:$0xff] }
 0x16c   : > { %v606_v43 = vmax.f32 %v605_v41, 0.0 }
 0x16e   : > { %607 = vst.msk [vmem:[#allocation2 + $0x2] sm:$0xff] %vm437_vm0, %v606_v43 }
 0x175   : > { %v610_v45 = vld [vmem:[#allocation2 + $0x2] sm:$0xff] }
 0x176   : > { %v609_v46 = vld [vmem:[#allocation2 + $0x1] sm:$0xff]  ;;  %618 = vrot.lane.b32.xlu0 %v610_v45, %s1177_s14 }
 0x177   : > { %v612_v47 = vld [vmem:[#allocation2 + $0x4] sm:$0xff]  ;;  %614 = vrot.lane.b32.xlu1 %v609_v46, %s1175_s24 }
 0x178   : > { %v629_v48 = vpack.c.bf16 %v612_v47, %v612_v47  ;;  %v611_v49 = vld [vmem:[#allocation2 + $0x3] sm:$0xff] }
 0x179   : > { %v608_v51 = vld [vmem:[#allocation2] sm:$0xff] }
 0x17a   : > { %1086 = vmatprep.mubr.msk.bf16.mxu1 %vm437_vm0, %v629_v48 }
 0x17b   : > { %622 = vrot.lane.b32.xlu1 %v611_v49, %s1176_s27 }
 0x1e8   : > { %v619_v52 = vpop.permute.xlu0 %618 }
 0x1e9   : > { %v615_v50 = vpop.permute.xlu1 %614 }
 0x1ea   : > { %v625_v53 = vsel %vm437_vm0, %v608_v51, %v615_v50 }
 0x1eb   : > { %v626_v55 = vsel %vm461_vm2, %v625_v53, %v619_v52 }
 0x1ed   : > { %v623_v54 = vpop.permute.xlu1 %622 }
 0x1ee   : > { %v627_v56 = vsel %vm463_vm3, %v626_v55, %v623_v54 }
 0x1ef   : > { %v628_v57 = vpack.c.bf16 %v627_v56, %v627_v56 }
 0x1f1   : > { %746 = vmatmul.mubr.bf16.vlgmr.msra.gmra.mrb[0].mxu1 %v628_v57 }
 0x1f2   : > { %1112 = vmatpush3.bf16.msra.mxu1 %v1163_v27  ;;  %1115 = vmatprep.mubr.msk.bf16.mxu1 %vm1178_vm4, %v1173_v0 }
 0x1f3   : > { %1113 = vmatprep.subr.bf16.mxu1 %v1173_v0  ;;  %v1102_v0 = vld [vmem:[%s1467_s12] ss:$0 sm:$0xff] }
 0x1f6   : > { %1114 = vmatpush3.bf16.msra.mxu1 %v1164_v28 }
 0x2c4   : > { %v747_v5 = vpop.f32.mrb[0].mxu1 }
 0x2c5   : > { %v760_v7 = vmul.f32 %v1087_v4, %v747_v5  ;;  %v749_v8 = vpop.f32.mrb[1].mxu1 }
 0x2c6   : > { %v750_v10 = vpop.f32.mrb[2].mxu1 }
 0x2c7   : > { %v768_v11 = vadd.f32 %v1088_v6, %v760_v7  ;;  %v751_v12 = vpop.f32.mrb[3].mxu1 }
 0x2c9   : > { %v769_v13 = vmax.f32 %v768_v11, 0.0 }
 0x2cb   : > { %770 = vst.msk [vmem:[#allocation2 + $0x2] sm:$0xff] %vm437_vm0, %v769_v13 }
 0x2d2   : > { %v773_v15 = vld [vmem:[#allocation2 + $0x2] sm:$0xff] }
 0x2d3   : > { %v772_v16 = vld [vmem:[#allocation2 + $0x1] sm:$0xff]  ;;  %781 = vrot.lane.b32.xlu1 %v773_v15, %s1177_s14  ;;  %s435_s14 = scalar_lea.vmem %s1468_s13, %s1061_s29 }
 0x2d4   : > { %v775_v17 = vld [vmem:[#allocation2 + $0x4] sm:$0xff]  ;;  %777 = vrot.lane.b32.xlu0 %v772_v16, %s1175_s24 }
 0x2d5   : > { %v792_v18 = vpack.c.bf16 %v775_v17, %v775_v17  ;;  %v774_v19 = vld [vmem:[#allocation2 + $0x3] sm:$0xff] }
 0x2d6   : > { %v771_v20 = vld [vmem:[#allocation2] sm:$0xff] }
 0x2d7   : > { %1099 = vmatprep.mubr.msk.bf16.mxu0 %vm437_vm0, %v792_v18 }
 0x2d8   : > { %785 = vrot.lane.b32.xlu0 %v774_v19, %s1176_s27 }
 0x345   : > { %v782_v21 = vpop.permute.xlu1 %781 }
 0x346   : > { %v778_v1 = vpop.permute.xlu0 %777 }
 0x347   : > { %v788_v22 = vsel %vm437_vm0, %v771_v20, %v778_v1 }
 0x348   : > { %v789_v24 = vsel %vm461_vm2, %v788_v22, %v782_v21 }
 0x34a   : > { %v786_v23 = vpop.permute.xlu0 %785 }
 0x34b   : > { %v790_v25 = vsel %vm463_vm3, %v789_v24, %v786_v23 }
 0x34c   : > { %v791_v26 = vpack.c.bf16 %v790_v25, %v790_v25 }
 0x34e   : > { %909 = vmatmul.mubr.bf16.vlgmr.msra.gmra.mrb[4].mxu0 %v791_v26 }
 0x421   : > { %v910_v30 = vpop.f32.mrb[4].mxu0 }
 0x422   : > { %v923_v32 = vmul.f32 %v1100_v29, %v910_v30  ;;  %v912_v33 = vpop.f32.mrb[5].mxu0 }
 0x423   : > { %v913_v34 = vpop.f32.mrb[6].mxu0 }
 0x424   : > { %v931_v35 = vadd.f32 %v1101_v31, %v923_v32  ;;  %v914_v36 = vpop.f32.mrb[7].mxu0 }
 0x426   : > { %v932_v37 = vmax.f32 %v931_v35, 0.0 }
 0x428   : > { %v933_v38 = vpack.c.bf16 %v932_v37, %v932_v37 }
 0x42a   : > { %1116 = vmatmul.mubr.msk.bf16.vlgmr.msra.gmra.mrb[4].mxu1 %vm437_vm0, %v933_v38 }
 0x4fd   : > { %v994_v39 = vpop.f32.mrb[4].mxu1 }
 0x4fe   : > { %v995_v41 = vadd.f32 %v1102_v0, %v994_v39  ;;  %v1117_v42 = vpop.f32.mrb[5].mxu1 }
 0x4ff   : > { %v997_v43 = vpop.f32.mrb[6].mxu1 }
 0x500   : > { %v1001_v44 = vadd.f32 %v1000_v40, %v995_v41  ;;  %v1118_v45 = vpop.f32.mrb[7].mxu1 }
 0x502   : > { %1002 = vst.msk [vmem:[%s435_s14] sm:$0xff] %vm437_vm0, %v1001_v44 }
 0x503 PF: > { %s23_s25 = sadd.s32 1, %s1171_s25  }
 0x504   : > { %p20_p4 = scmp.ge.s32.totalorder %s23_s25, 4  }
 0x506   :  { %22 = sbr.rel (!%p20_p4) target bundleno = 1 (0x1), region = 102 }

// kernel: encoder_forward.5
= control target key start
LH: loop header
LB: loop body
LE: loop exit
PB: predicated region body
PF: predicated region fallthrough
CT: control target
= control target key end

     0   :  { %s1809_s0 = inlined_call_operand.vmem [shape: f32[2,8,32], index: 0, kind: input, shape index: {}]   ;;  %s1810_s1 = inlined_call_operand.vmem [shape: bf16[32,96], index: 1, kind: input, shape index: {}]   ;;  %s1811_s2 = inlined_call_operand.vmem [shape: f32[1,96], index: 2, kind: input, shape index: {}]   ;;  %s1812_s3 = inlined_call_operand.vmem [shape: bf16[32,32], index: 3, kind: input, shape index: {}]   ;;  %s1813_s4 = inlined_call_operand.vmem [shape: bf16[32,32], index: 4, kind: input, shape index: {}]   ;;  %s1814_s5 = inlined_call_operand.vmem [shape: f32[1,32], index: 5, kind: input, shape index: {}]   ;;  %s1815_s6 = inlined_call_operand.vmem [shape: f32[1,32], index: 6, kind: input, shape index: {}]   ;;  %s1816_s7 = inlined_call_operand.vmem [shape: f32[1,32], index: 7, kind: input, shape index: {}]   ;;  %s1817_s8 = inlined_call_operand.vmem [shape: bf16[32,64], index: 8, kind: input, shape index: {}]   ;;  %s1818_s9 = inlined_call_operand.vmem [shape: f32[1,64], index: 9, kind: input, shape index: {}]   ;;  %s1819_s10 = inlined_call_operand.vmem [shape: bf16[64,32], index: 10, kind: input, shape index: {}]   ;;  %s1820_s11 = inlined_call_operand.vmem [shape: f32[1,32], index: 11, kind: input, shape index: {}]   ;;  %s1821_s12 = inlined_call_operand.vmem [shape: f32[1,32], index: 12, kind: input, shape index: {}]   ;;  %s1822_s13 = inlined_call_operand.vmem [shape: f32[1,32], index: 13, kind: input, shape index: {}]   ;;  %s1823_s14 = inlined_call_operand.hbm [shape: f32[2,8,32], index: 14, kind: output, shape index: {}]  }
   0x1   :  { %1824 = sst [smem:[#allocation5_spill]] %s1809_s0 }
   0x2   :  { %1825 = sst [smem:[#allocation6_spill]] %s1810_s1 }
   0x3   :  { %1826 = sst [smem:[#allocation7_spill]] %s1811_s2 }
   0x4   :  { %1827 = sst [smem:[#allocation8_spill]] %s1812_s3 }
   0x5   :  { %1828 = sst [smem:[#allocation9_spill]] %s1813_s4 }
   0x6   :  { %19 = vsyncpa [#allocation3], 0 }
   0x7   :  { %21 = vsyncpa [#allocation3 + $0x1], 0  ;;  %s1577_s29 = smov 0   ;;  %s1579_s30 = smov 0  }
   0x8   :  { %s1581_s15 = smov 0   ;;  %s1583_s16 = smov 0  }
   0x9 LB: > { %s1598_s17 = sadd.s32 4294967295, %s1492_s16   ;;  %s1220_s18 = sadd.s32 4294967294, %s1492_s16   ;;  %s1492_s16 = sphi %s1583_s16, %s1839_s16   ;;  %s1488_s15 = sphi %s1581_s15, %s1838_s15   ;;  %s1484_s30 = sphi %s1579_s30, %s1837_s30   ;;  %s1480_s29 = sphi %s1577_s29, %s1836_s29  }
   0xa   : > { %s1602_s19 = sadd.s32 1, %s1492_s16   ;;  %s333_s20 = sadd.s32 1, %s1488_s15 }
   0xb   : > { %s330_s21 = ssub.s32 %s1492_s16, %s1602_s19  ;;  %p343_p0 = scmp.ne.s32.totalorder %s1488_s15, %s1484_s30 }
   0xc   : > { %p331_p1 = scmp.eq.s32.totalorder %s330_s21, 0  ;;  %p344_p2 = scmp.eq.s32.totalorder %s1598_s17, 1 }
   0xd   : > { %p349_p3 = scmp.ne.s32.totalorder %s1484_s30, %s1480_s29  ;;  %p350_p4 = scmp.eq.s32.totalorder %s1220_s18, 1 }
   0xe   : > { %s1613_s22 = scalar_select %p331_p1, %s1488_s15, %s333_s20  }
   0xf   : > { %p1615_p5 = por %p344_p2, %p343_p0  ;;  %p1619_p6 = por %p350_p4, %p349_p3 }
  0x10   : > { %p1223_p7 = scmp.ge.s32.totalorder %s1492_s16, 1  ;;  %p414_p8 = scmp.lt.s32.totalorder %s1492_s16, 3 }
  0x12   : > { %p415_p9 = pnand %p1223_p7, %p414_p8 }
  0x13   : > { %s1831_s1 = sld [smem:[#allocation6_spill]] (!%p415_p9)  ;;  %v1494_v1 = vmov (!%p415_p9), 0.0   ;;  %vm1495_vm0 = vmmov (!%p415_p9), 0   ;;  %p459_p10 = scmp.lt.s32.totalorder (!%p415_p9), %s1598_s17, 1  ;;  %vm489_vm1 = vcmask (!%p415_p9), 261120   ;;  %vm541_vm2 = vcmask (!%p415_p9), 130048  }
  0x14   : > { %418 = sbr.rel (%p415_p9) target bundleno = 3178 (0xc6a), region = 76  ;;  %1286 = vmatprep.subr.bf16.mxu0 (!%p415_p9), %v1494_v1  ;;  %1294 = vmatprep.subr.bf16.mxu1 (!%p415_p9), %v1494_v1  ;;  %s1832_s0 = sld [smem:[#allocation5_spill]] (!%p415_p9)  ;;  %vm589_vm3 = vcmask (!%p415_p9), 64512   ;;  %vm607_vm4 = vcmask (!%p415_p9), 1043456   ;;  %vm1072_vm5 = vcmask (!%p415_p9), 523264  }
  0x15   : > { %1290 = vmatprep.mubr.msk.bf16.mxu0 (!%p415_p9), %vm1495_vm0, %v1494_v1  ;;  %1296 = vmatprep.mubr.msk.bf16.mxu1 (!%p415_p9), %vm1495_vm0, %v1494_v1  ;;  %s1833_s2 = sld [smem:[#allocation7_spill]] (!%p415_p9)  ;;  %s1498_s21 = smov (!%p415_p9), 80  }
  0x16   : > { %s1499_s25 = smov (!%p415_p9), 112   ;;  %s1834_s4 = sld [smem:[#allocation9_spill]] (!%p415_p9) }
  0x17   : > { %s1835_s3 = sld [smem:[#allocation8_spill]] (!%p415_p9) }
  0x19   : > { %v1404_v0 = vld [vmem:[%s1831_s1] sm:$0xff] (!%p415_p9)   ;;  %v1405_v2 = vld [vmem:[%s1831_s1 + $0x8] sm:$0xff] (!%p415_p9)  }
  0x1a   : > { %1287 = vmatpush3.bf16.msra.mxu0 (!%p415_p9), %v1404_v0 }
  0x1b   : > { %1288 = vmatprep.subr.bf16.mxu0 %v1494_v1  ;;  %s460_s18 = scalar_select %p459_p10, %s1598_s17, 1  ;;  %v1226_v5 = vld [vmem:[%s1833_s2] ss:$0 sm:$0xff] }
  0x1c   : > { %v1408_v25 = vld [vmem:[%s1834_s4] sm:$0xff]   ;;  %v1409_v62 = vld [vmem:[%s1834_s4 + $0x8] sm:$0xff]  }
  0x1d   : > { %s1225_s20 = sshll.u32 %s460_s18, 3  ;;  %s1496_s18 = smov 96   ;;  %v1406_v31 = vld [vmem:[%s1835_s3] sm:$0xff]   ;;  %v1407_v33 = vld [vmem:[%s1835_s3 + $0x8] sm:$0xff]  }
  0x1e   : > { %1289 = vmatpush3.bf16.msra.mxu0 %v1405_v2  ;;  %s462_s26 = scalar_lea.vmem %s1832_s0, %s1225_s20  ;;  %s1497_s20 = smov 64  }
  0x1f   : > { %1300 = vmatprep.subr.bf16.mxu0 %v1494_v1  ;;  %v1644_v3 = vld [vmem:[%s462_s26] sm:$0xff]  ;;  %s456_s0 = sand.u32 1, %s1484_s30   ;;  %s1257_s26 = sshll.u32 %s1598_s17, 7 }
  0x20   : > { %v465_v4 = vpack.c.bf16 %v1644_v3, %v1644_v3  ;;  %s1224_s28 = sshll.u32 %s456_s0, 3  ;;  %s1766_s4 = scalar_lea.hbm %s1823_s14, %s1257_s26 }
  0x21   : > { %s458_s27 = scalar_lea.vmem [#allocation2], %s1224_s28  ;;  %s1501_s17 = smov [#allocation2]  }
  0x22   : > { %1291 = vmatmul.mubr.msk.bf16.vlgmr.msra.gmra.mrb[0].mxu0 %vm489_vm1, %v465_v4  ;;  %s1161_s1 = sshll.u32 %s458_s27, 4  ;;  %s1434_s28 = sshll.u32 %s1501_s17, 4  ;;  %s1768_s1 = int_to_ptr.vmem [resolvable:$true] %s1161_s1  ;;  %s1435_s28 = int_to_ptr.vmem [resolvable:$false] %s1434_s28 }
  0x23   : > { %1302 = vmatprep.mubr.msk.bf16.mxu0 %vm1495_vm0, %v1494_v1  ;;  %p1437_p0 = scmp.lt.s32.totalorder %s1768_s1, %s1435_s28 }
  0xf5   : > { %v527_v6 = vpop.f32.mrb[0].mxu0 }
  0xf6   : > { %v528_v7 = vadd.f32 %v1226_v5, %v527_v6  ;;  %v1292_v8 = vpop.f32.mrb[1].mxu0 }
  0xf7   : > { %v530_v9 = vpop.f32.mrb[2].mxu0 }
  0xf8   : > { %v1654_v10 = vpack.c.bf16 %v528_v7, %v528_v7  ;;  %v1293_v11 = vpop.f32.mrb[3].mxu0 }
  0xfa   : > { %539 = vrot.lane.b32.xlu0 %v1654_v10, %s1496_s18  ;;  %s1148_s18 = scalar_lea.sflag [#allocation3], %s456_s0 }
 0x16c   : > { %v540_v12 = vpop.permute.xlu0 %539 }
 0x16d   : > { %v546_v13 = vsel %vm541_vm2, %v540_v12, 0 }
 0x16e   : > { %1295 = vmatpush3.bf16.xpose.msra.mxu1 %v546_v13  ;;  %v1241_v13 = vld [vmem:[%s1814_s5] ss:$0 sm:$0xff] }
 0x16f   : > { %1306 = vmatprep.subr.bf16.mxu1 %v1494_v1 }
 0x175   : > { %1297 = vmatmul.mubr.msk.bf16.vlgmr.msra.gmra.mrb[0].mxu1 %vm541_vm2, %v1654_v10 }
 0x176   : > { %1308 = vmatprep.mubr.msk.bf16.mxu1 %vm1495_vm0, %v1494_v1  ;;  %1307 = vmatpush3.bf16.msra.mxu1 %v1408_v25 }
 0x177   : > { %1320 = vmatprep.subr.bf16.mxu1 %v1494_v1 }
 0x248   : > { %v582_v14 = vpop.f32.mrb[0].mxu1 }
 0x249   : > { %v588_v15 = vmul.f32 0.125, %v582_v14  ;;  %v1298_v16 = vpop.f32.mrb[1].mxu1 }
 0x24a   : > { %v585_v17 = vpop.f32.mrb[2].mxu1 }
 0x24b   : > { %v1299_v18 = vpop.f32.mrb[3].mxu1  ;;  %v590_v19 = vsel %vm589_vm3, %v588_v15, -inf }
 0x24c   : > { %591 = vmax.xlane.f32.xlu0 %v590_v19 }
 0x2d9   : > { %v592_v20 = vpop.xlane.xlu0 %591 }
 0x2da   : > { %v593_v21 = vsub.f32 %v588_v15, %v592_v20 }
 0x2dc   : > { %v594_v22 = vmul.f32 1.442695, %v593_v21 }
 0x2de   : > { %1416 = vpow2.f32 %v594_v22 }
 0x2e8   : > { %v1417_v23 = vpop.eup %1416 }
 0x2e9   : > { %v596_v24 = vsel %vm589_vm3, %v1417_v23, 0.0 }
 0x2ea   : > { %597 = vadd.xlane.f32.xlu1 %v596_v24 }
 0x2fb   : > { %602 = vrot.lane.b32.xlu1 %v1654_v10, %s1497_s20  ;;  %s1430_s20 = scalar_lea.vmem %s1768_s1, 128 }
 0x2fc   : > { %p1431_p11 = scmp.ne.s32.totalorder %s1768_s1, %s1430_s20 }
 0x2fe   : > { %p1432_p12 = pnand %p1431_p11, %p1615_p5 }
 0x2ff   : > { %759 = vrot.lane.b32.xlu1 %v1654_v10, %s1498_s21  ;;  %s1436_s21 = scalar_lea.vmem %s1435_s28, 256 }
 0x300   : > { %p1433_p13 = pneg %p1432_p12  ;;  %p1438_p1 = scmp.lt.s32.totalorder %s1436_s21, %s1430_s20 }
 0x302   : > { %p1439_p2 = por %p1438_p1, %p1437_p0 }
 0x303   : > { %757 = vrot.lane.b32.xlu1 %v1654_v10, %s1499_s25  ;;  %s1500_s25 = smov 48  }
 0x304   : > { %p1440_p3 = pnand %p1439_p2, %p1433_p13 }
 0x377   : > { %v598_v26 = vpop.xlane.xlu1 %597 }
 0x378   : > { %1418 = vrcp.f32 %v598_v26  ;;  %v1410_v26 = vld [vmem:[%s1817_s8] sm:$0xff]  }
 0x37b   : > { %v603_v27 = vpop.permute.xlu1 %602 }
 0x37c   : > { %v609_v28 = vsel %vm607_vm4, %v603_v27, 0  ;;  %v1411_v27 = vld [vmem:[%s1817_s8 + $0x8] sm:$0xff]  }
 0x37d   : > { %1301 = vmatpush3.bf16.msra.mxu0 %v609_v28 }
 0x37e   : > { %1312 = vmatprep.subr.bf16.mxu0 %v1494_v1 }
 0x37f   : > { %v760_v34 = vpop.permute.xlu1 %759 }
 0x380   : > { %v765_v39 = vsel %vm541_vm2, %v760_v34, 0 }
 0x382   : > { %v1419_v29 = vpop.eup %1418 }
 0x383   : > { %v600_v30 = vmul.f32 %v1419_v29, %v1417_v23  ;;  %v758_v43 = vpop.permute.xlu1 %757 }
 0x385   : > { %v601_v32 = vpack.c.bf16 %v600_v30, %v600_v30 }
 0x387   : > { %1303 = vmatmul.mubr.msk.bf16.vlgmr.msra.gmra.mrb[4].mxu0 %vm589_vm3, %v601_v32 }
 0x388   : > { %1313 = vmatpush3.bf16.msra.mxu0 %v1406_v31  ;;  %1316 = vmatprep.mubr.msk.bf16.mxu0 %vm1495_vm0, %v1494_v1  ;;  %v1242_v31 = vld [vmem:[%s1815_s6] ss:$0 sm:$0xff] }
 0x389   : > { %1314 = vmatprep.subr.bf16.mxu0 %v1494_v1 }
 0x38c   : > { %1315 = vmatpush3.bf16.msra.mxu0 %v1407_v33  ;;  %v1243_v33 = vld [vmem:[%s1816_s7] ss:$0 sm:$0xff] }
 0x38d   : > { %1326 = vmatprep.subr.bf16.mxu0 %v1494_v1 }
 0x38f   : > { %1317 = vmatmul.mubr.msk.bf16.vlgmr.msra.gmra.mrb[8].mxu0 %vm489_vm1, %v1654_v10 }
 0x390   : > { %1328 = vmatprep.mubr.msk.bf16.mxu0 %vm1495_vm0, %v1494_v1 }
 0x45a   : > { %v645_v35 = vpop.f32.mrb[4].mxu0 }
 0x45b   : > { %v651_v36 = vpack.c.bf16 %v645_v35, %v645_v35  ;;  %v1304_v37 = vpop.f32.mrb[5].mxu0 }
 0x45c   : > { %v648_v38 = vpop.f32.mrb[6].mxu0  ;;  %v1412_v37 = vld [vmem:[%s1819_s10] sm:$0xff]  }
 0x45d   : > { %v1305_v40 = vpop.f32.mrb[7].mxu0  ;;  %1309 = vmatmul.mubr.msk.bf16.vlgmr.msra.gmra.mrb[4].mxu1 %vm541_vm2, %v651_v36  ;;  %v1413_v38 = vld [vmem:[%s1819_s10 + $0x8] sm:$0xff]  }
 0x45e   : > { %1321 = vmatpush3.bf16.xpose.msra.mxu1 %v765_v39  ;;  %1322 = vmatprep.mubr.msk.bf16.mxu1 %vm1495_vm0, %v1494_v1  ;;  %v1414_v39 = vld [vmem:[%s1819_s10 + $0x10] sm:$0xff]   ;;  %v1415_v40 = vld [vmem:[%s1819_s10 + $0x18] sm:$0xff]  }
 0x45f   : > { %1332 = vmatprep.subr.bf16.mxu1 %v1494_v1 }
 0x462   : > { %v751_v41 = vpop.f32.mrb[8].mxu0 }
 0x463   : > { %v1318_v42 = vpop.f32.mrb[9].mxu0 }
 0x464   : > { %v754_v44 = vpop.f32.mrb[10].mxu0 }
 0x465   : > { %v1319_v45 = vpop.f32.mrb[11].mxu0  ;;  %1323 = vmatmul.mubr.msk.bf16.vlgmr.msra.gmra.mrb[8].mxu1 %vm541_vm2, %v758_v43 }
 0x466   : > { %1334 = vmatprep.mubr.msk.bf16.mxu1 %vm1495_vm0, %v1494_v1  ;;  %1333 = vmatpush3.bf16.msra.mxu1 %v1409_v62 }
 0x467   : > { %1346 = vmatprep.subr.bf16.mxu1 %v1494_v1 }
 0x530   : > { %v697_v46 = vpop.f32.mrb[4].mxu1 }
 0x531   : > { %v752_v47 = vadd.f32 %v751_v41, %v697_v46  ;;  %v1310_v48 = vpop.f32.mrb[5].mxu1  ;;  %v1244_v41 = vld [vmem:[%s1818_s9] ss:$0 sm:$0xff] }
 0x532   : > { %v700_v49 = vpop.f32.mrb[6].mxu1 }
 0x533   : > { %v1311_v50 = vpop.f32.mrb[7].mxu1 }
 0x538   : > { %v801_v51 = vpop.f32.mrb[8].mxu1 }
 0x539   : > { %v807_v52 = vmul.f32 0.125, %v801_v51  ;;  %v1324_v53 = vpop.f32.mrb[9].mxu1 }
 0x53a   : > { %v804_v54 = vpop.f32.mrb[10].mxu1 }
 0x53b   : > { %v1325_v55 = vpop.f32.mrb[11].mxu1  ;;  %v808_v56 = vsel %vm589_vm3, %v807_v52, -inf }
 0x53c   : > { %809 = vmax.xlane.f32.xlu1 %v808_v56 }
 0x5c9   : > { %v810_v57 = vpop.xlane.xlu1 %809 }
 0x5ca   : > { %v811_v58 = vsub.f32 %v807_v52, %v810_v57  ;;  %v1248_v52 = vld [vmem:[%s1820_s11] ss:$0 sm:$0xff] }
 0x5cc   : > { %v812_v59 = vmul.f32 1.442695, %v811_v58 }
 0x5ce   : > { %1420 = vpow2.f32 %v812_v59 }
 0x5d8   : > { %v1421_v60 = vpop.eup %1420 }
 0x5d9   : > { %v814_v61 = vsel %vm589_vm3, %v1421_v60, 0.0 }
 0x5da   : > { %815 = vadd.xlane.f32.xlu0 %v814_v61 }
 0x5f0   : > { %820 = vrot.lane.b32.xlu0 %v1654_v10, %s1500_s25 }
 0x667   : > { %v816_v63 = vpop.xlane.xlu0 %815 }
 0x668   : > { %1422 = vrcp.f32 %v816_v63 }
 0x66b   : > { %v821_v0 = vpop.permute.xlu0 %820 }
 0x66c   : > { %v826_v2 = vsel %vm607_vm4, %v821_v0, 0 }
 0x66d   : > { %1327 = vmatpush3.bf16.msra.mxu0 %v826_v2 }
 0x66e   : > { %1338 = vmatprep.subr.bf16.mxu0 %v1494_v1 }
 0x672   : > { %v1423_v4 = vpop.eup %1422 }
 0x673   : > { %v818_v5 = vmul.f32 %v1423_v4, %v1421_v60 }
 0x675   : > { %v819_v6 = vpack.c.bf16 %v818_v5, %v818_v5 }
 0x677   : > { %1329 = vmatmul.mubr.msk.bf16.vlgmr.msra.gmra.mrb[12].mxu0 %vm589_vm3, %v819_v6 }
 0x678   : > { %1342 = vmatprep.mubr.msk.bf16.mxu0 %vm1495_vm0, %v1494_v1  ;;  %1339 = vmatpush3.bf16.msra.mxu0 %v1410_v26 }
 0x679   : > { %1340 = vmatprep.subr.bf16.mxu0 %v1494_v1 }
 0x67c   : > { %1341 = vmatpush3.bf16.msra.mxu0 %v1411_v27 }
 0x74a   : > { %v862_v7 = vpop.f32.mrb[12].mxu0 }
 0x74b   : > { %v868_v8 = vpack.c.bf16 %v862_v7, %v862_v7  ;;  %v1330_v9 = vpop.f32.mrb[13].mxu0  ;;  %v1254_v7 = vld [vmem:[%s1821_s12] ss:$0 sm:$0xff] }
 0x74c   : > { %v865_v10 = vpop.f32.mrb[14].mxu0  ;;  %v1255_v9 = vld [vmem:[%s1822_s13] ss:$0 sm:$0xff] }
 0x74d   : > { %v1331_v11 = vpop.f32.mrb[15].mxu0  ;;  %1335 = vmatmul.mubr.msk.bf16.vlgmr.msra.gmra.mrb[12].mxu1 %vm541_vm2, %v868_v8 }
 0x74e   : > { %1354 = vmatprep.mubr.msk.bf16.mxu1 %vm1495_vm0, %v1494_v1  ;;  %1347 = vmatpush3.bf16.msra.mxu1 %v1412_v37 }
 0x74f   : > { %1348 = vmatprep.subr.bf16.mxu1 %v1494_v1 }
 0x752   : > { %1349 = vmatpush3.bf16.msra.mxu1 %v1413_v38 }
 0x753   : > { %1350 = vmatprep.subr.bf16.mxu1 %v1494_v1 }
 0x756   : > { %1351 = vmatpush3.bf16.msra.mxu1 %v1414_v39 }
 0x757   : > { %1352 = vmatprep.subr.bf16.mxu1 %v1494_v1 }
 0x75a   : > { %1353 = vmatpush3.bf16.msra.mxu1 %v1415_v40 }
 0x820   : > { %v914_v12 = vpop.f32.mrb[12].mxu1 }
 0x821   : > { %v920_v14 = vadd.f32 %v914_v12, %v752_v47  ;;  %v1336_v15 = vpop.f32.mrb[13].mxu1 }
 0x822   : > { %v917_v16 = vpop.f32.mrb[14].mxu1 }
 0x823   : > { %v928_v17 = vadd.f32 %v1241_v13, %v920_v14  ;;  %v1337_v18 = vpop.f32.mrb[15].mxu1 }
 0x825   : > { %v929_v19 = vadd.f32 %v928_v17, %v1644_v3 }
 0x827   : > { %v932_v20 = vsel %vm489_vm1, %v929_v19, 0.0 }
 0x828   : > { %933 = vadd.xlane.f32.xlu0 %v932_v20 }
 0x8b5   : > { %v934_v21 = vpop.xlane.xlu0 %933 }
 0x8b6   : > { %v936_v22 = vmul.f32 0.03125, %v934_v21 }
 0x8b8   : > { %v937_v23 = vsub.f32 %v929_v19, %v936_v22 }
 0x8ba   : > { %v938_v24 = vmul.f32 %v937_v23, %v937_v23 }
 0x8bc   : > { %v939_v25 = vsel %vm489_vm1, %v938_v24, 0.0 }
 0x8bd   : > { %940 = vadd.xlane.f32.xlu1 %v939_v25 }
 0x94a   : > { %v941_v3 = vpop.xlane.xlu1 %940 }
 0x94b   : > { %v942_v28 = vmul.f32 0.03125, %v941_v3 }
 0x94d   : > { %v943_v29 = vadd.f32 1e-05, %v942_v28 }
 0x94f   : > { %1424 = vrsqrt.f32 %v943_v29 }
 0x959   : > { %v1425_v30 = vpop.eup %1424 }
 0x95a   : > { %v945_v32 = vmul.f32 %v1425_v30, %v937_v23 }
 0x95c   : > { %v952_v34 = vmul.f32 %v1242_v31, %v945_v32 }
 0x95e   : > { %v959_v35 = vadd.f32 %v1243_v33, %v952_v34 }
 0x960   : > { %v960_v36 = vpack.c.bf16 %v959_v35, %v959_v35 }
 0x962   : > { %1343 = vmatmul.mubr.msk.bf16.vlgmr.msra.gmra.mrb[16].mxu0 %vm489_vm1, %v960_v36 }
 0xa35   : > { %v1021_v42 = vpop.f32.mrb[16].mxu0 }
 0xa36   : > { %v1022_v43 = vadd.f32 %v1244_v41, %v1021_v42  ;;  %v1344_v44 = vpop.f32.mrb[17].mxu0 }
 0xa37   : > { %v1024_v45 = vpop.f32.mrb[18].mxu0 }
 0xa38   : > { %v1028_v46 = vmul.f32 0.70710677, %v1022_v43  ;;  %v1345_v47 = vpop.f32.mrb[19].mxu0  ;;  %v1027_v49 = vmul.f32 0.5, %v1022_v43 }
 0xa3a   : > { %1426 = verf.f32 %v1028_v46 }
 0xa44   : > { %v1427_v48 = vpop.eup %1426 }
 0xa45   : > { %v1030_v50 = vadd.f32 1.0, %v1427_v48 }
 0xa47   : > { %v1031_v1 = vmul.f32 %v1030_v50, %v1027_v49 }
 0xa49   : > { %v1032_v51 = vpack.c.bf16 %v1031_v1, %v1031_v1 }
 0xa4b   : > { %1355 = vmatmul.mubr.msk.bf16.vlgmr.msra.gmra.mrb[16].mxu1 %vm1072_vm5, %v1032_v51 }
 0xb1e   : > { %v1110_v53 = vpop.f32.mrb[16].mxu1 }
 0xb1f   : > { %v1111_v54 = vadd.f32 %v1248_v52, %v1110_v53  ;;  %v1356_v55 = vpop.f32.mrb[17].mxu1 }
 0xb20   : > { %v1113_v56 = vpop.f32.mrb[18].mxu1 }
 0xb21   : > { %v1357_v57 = vpop.f32.mrb[19].mxu1  ;;  %v1116_v58 = vadd.f32 %v1111_v54, %v959_v35 }
 0xb23   : > { %v1119_v59 = vsel %vm489_vm1, %v1116_v58, 0.0 }
 0xb24   : > { %1120 = vadd.xlane.f32.xlu1 %v1119_v59 }
 0xbb1   : > { %v1121_v60 = vpop.xlane.xlu1 %1120 }
 0xbb2   : > { %v1122_v61 = vmul.f32 0.03125, %v1121_v60 }
 0xbb4   : > { %v1123_v62 = vsub.f32 %v1116_v58, %v1122_v61 }
 0xbb6   : > { %v1124_v63 = vmul.f32 %v1123_v62, %v1123_v62 }
 0xbb8   : > { %v1125_v0 = vsel %vm489_vm1, %v1124_v63, 0.0 }
 0xbb9   : > { %1126 = vadd.xlane.f32.xlu1 %v1125_v0 }
 0xc46   : > { %v1127_v2 = vpop.xlane.xlu1 %1126 }
 0xc47   : > { %v1128_v4 = vmul.f32 0.03125, %v1127_v2 }
 0xc49   : > { %v1129_v5 = vadd.f32 1e-05, %v1128_v4 }
 0xc4b   : > { %1428 = vrsqrt.f32 %v1129_v5 }
 0xc55   : > { %v1429_v6 = vpop.eup %1428 }
 0xc56   : > { %v1131_v8 = vmul.f32 %v1429_v6, %v1123_v62 }
 0xc58   : > { %v1138_v10 = vmul.f32 %v1254_v7, %v1131_v8 }
 0xc5a   : > { %v1145_v11 = vadd.f32 %v1255_v9, %v1138_v10 }
 0xc5c   : > { %1146 = vst.msk [vmem:[%s458_s27] sm:$0xff] %vm489_vm1, %v1145_v11 }
 0xc5d   : > { %1443 = shalt.err (!%p1440_p3)
}
 0xc5e   : > { %s1444_s2 = scalar_lea.hbm %s1766_s4, 128  ;;  %s1448_s25 = scalar_lea.hbm %s1823_s14, 256 }
 0xc5f   : > { %p1445_p4 = scmp.ne.s32.totalorder %s1766_s4, %s1444_s2  ;;  %p1449_p9 = scmp.lt.u32.totalorder %s1766_s4, %s1823_s14 }
 0xc60   : > { %p1450_p10 = scmp.lt.u32.totalorder %s1448_s25, %s1444_s2  ;;  %p1452_p12 = scmp.lt.u32.totalorder %s1444_s2, %s1766_s4 }
 0xc61   : > { %p1446_p7 = pnand %p1445_p4, %p1615_p5 }
 0xc62   : > { %p1451_p11 = por %p1450_p10, %p1449_p9 }
 0xc63   : > { %p1447_p8 = pneg %p1446_p7 }
 0xc64   : > { %p1453_p13 = por %p1452_p12, %p1451_p11 }
 0xc66   : > { %p1454_p0 = pnand %p1453_p13, %p1447_p8 }
 0xc68   : > { %1457 = shalt.err (!%p1454_p0)
}
 0xc69   : > { %1358 = dma.vmem_to_hbm [thread:$0]  (%p1615_p5), %s1768_s1, 128, %s1766_s4, %s1148_s18  }
 0xc6a PF: > { %p1364_p1 = scmp.ge.s32.totalorder %s1492_s16, 2  ;;  %s1173_s20 = sand.u32 1, %s1480_s29  }
 0xc6b   : > { %s1174_s17 = scalar_lea.sflag [#allocation3], %s1173_s20 }
 0xc6c   : > { %p1361_p2 = pnand %p1364_p1, %p1619_p6 }
 0xc6e   : > { %1475 = dma.done.wait (!%p1361_p2), %s1174_s17, 128  }
 0xc6f   : > { %1477 = vsyncadd (!%p1361_p2), %s1174_s17, 4294967168  ;;  %p24_p3 = scmp.ge.s32.totalorder %s1602_s19, 4   ;;  %s1836_s29 = smov %s1484_s30 }
 0xc70   : > { %s1837_s30 = smov %s1488_s15  ;;  %s1838_s15 = smov %s1613_s22 }
 0xc71   : > { %s1839_s16 = smov %s1602_s19  ;;  %26 = sbr.rel (!%p24_p3) target bundleno = 9 (0x9), region = 111 }
 0xc78   :  { %1179 = vsyncpa [#allocation3], 1 }
 0xc79   :  { %1181 = vsyncpa [#allocation3 + $0x1], 1 }

</bundles_post_ra>
